<compile_context>
chip_gen: v6e
topology: v6e:2x2x1
jax: 0.10.0
libtpu: 0.0.40
codegen_flags: <defaults>
</compile_context>

<pallas_src>
import jax
import jax.numpy as jnp
import numpy as np
from jax import lax
from jax.experimental import pallas as pl
from jax.experimental.pallas import tpu as pltpu


# --------------------------------------------------------------------------
# Fused bidirectional-GRU Pallas kernel
# --------------------------------------------------------------------------
def _bigru_kernel(x_ref, w_ref, b_ref, h0_ref, out_ref):
    # x_ref : (L, 8, Nt)  row 0 = x[t] (fwd), row 1 = x[L-1-t] (bwd), rows 2..7 = 0
    # w_ref : (8D, 2D+8)  fused block-diagonal weights (see _pack_bigru)
    # b_ref : (8D, 1)     fused biases
    # h0_ref: (2D, 1)     initial hidden [h0_fwd ; h0_bwd]
    # out_ref:(L, 2D, Nt) fwd hidden in rows [:D], bwd hidden in rows [D:]
    L = x_ref.shape[0]
    Nt = x_ref.shape[2]
    D2 = h0_ref.shape[0]
    D = D2 // 2

    W = w_ref[...]                                      # hoisted, loop-invariant
    b = b_ref[...]
    h0 = jnp.broadcast_to(h0_ref[...], (D2, Nt))        # broadcast once, in kernel

    def step(t, h):
        # h: (2D, Nt); x_ref[t]: (8, Nt)  ->  h_aug: (2D+8, Nt)
        h_aug = jnp.concatenate([h, x_ref[t]], axis=0)
        # One matmul computes: r/z pre-acts (x, h, all biases), W_hn h + b_hn,
        # and W_in x + b_in -- for both directions.  Rows (D each):
        #   [r_f, r_b, z_f, z_b, hn_f, hn_b, xn_f, xn_b]
        g = jnp.dot(W, h_aug, preferred_element_type=jnp.float32) + b   # (8D, Nt)

        rz = jax.nn.sigmoid(g[:4 * D, :])               # (4D, Nt)  lane-dense
        r = rz[:2 * D, :]                               # [r_f ; r_b]
        z = rz[2 * D:, :]                               # [z_f ; z_b]
        n = jnp.tanh(g[6 * D:, :] + r * g[4 * D:6 * D, :])              # (2D, Nt)
        h_new = (1.0 - z) * n + z * h                                   # (2D, Nt)

        out_ref[t, :D, :] = h_new[:D, :]                # forward output at t
        out_ref[L - 1 - t, D:, :] = h_new[D:, :]        # backward output at L-1-t
        return h_new

    lax.fori_loop(0, L, step, h0)


def bigru(x_lt, W, bias, h0):
    """Fused bidirectional GRU.  x_lt: (L, N) time-major scalar input.
    Returns (L, 2D, N) hidden states (fwd rows [:D], bwd rows [D:])."""
    L, N = x_lt.shape
    D2 = h0.shape[0]
    n_tile = 128 if (N % 128 == 0) else N
    grid = (N // n_tile,)

    # Pack fwd / reversed scalar inputs as the two leading sublane rows so the
    # kernel only needs one dynamic leading-dim load per step.
    x_aug = jnp.concatenate(
        [x_lt[:, None, :], x_lt[::-1, None, :],
         jnp.zeros((L, 6, N), x_lt.dtype)], axis=1)                    # (L, 8, N)

    return pl.pallas_call(
        _bigru_kernel,
        out_shape=jax.ShapeDtypeStruct((L, D2, N), jnp.float32),
        grid_spec=pltpu.PrefetchScalarGridSpec(
            num_scalar_prefetch=0,
            grid=grid,
            in_specs=[
                pl.BlockSpec((L, 8, n_tile), lambda i: (0, 0, i)),
                pl.BlockSpec(W.shape, lambda i: (0, 0)),
                pl.BlockSpec(bias.shape, lambda i: (0, 0)),
                pl.BlockSpec(h0.shape, lambda i: (0, 0)),
            ],
            out_specs=pl.BlockSpec((L, D2, n_tile), lambda i: (0, 0, i)),
        ),
        compiler_params=pltpu.CompilerParams(
            dimension_semantics=("parallel",)),
    )(x_aug, W, bias, h0)


# --------------------------------------------------------------------------
# Fold Linear(1,D) + bidirectional GRU params into fused kernel weights
# --------------------------------------------------------------------------
def _pack_bigru(w_lin, b_lin, rnn, hidden, D):
    """Returns W (8D, 2D+8), bias (8D, 1), h0 (2D, 1).

    Row order (D rows each): r_f, r_b, z_f, z_b, hn_f, hn_b, xn_f, xn_b
    Column order: [h_f (D), h_b (D), x_fwd (1), x_bwd (1), zeros (6)].
    """
    def parts(wih, whh, bih, bhh):
        v = w_lin @ wih                       # (3D,)  x-scalar gains
        c = b_lin @ wih + bih.reshape(-1)     # (3D,)  folded input bias
        return v, c, bhh.reshape(-1), whh

    v_f, c_f, bh_f, whh_f = parts(rnn['wih_f'], rnn['whh_f'], rnn['bih_f'], rnn['bhh_f'])
    v_b, c_b, bh_b, whh_b = parts(rnn['wih_b'], rnn['whh_b'], rnn['bih_b'], rnn['bhh_b'])

    Zdd = jnp.zeros((D, D), jnp.float32)
    zcol = jnp.zeros((D, 1), jnp.float32)
    zpad = jnp.zeros((D, 6), jnp.float32)

    def row_block(wf, wb, vf_col, vb_col):
        return jnp.concatenate([wf, wb, vf_col, vb_col, zpad], axis=1)

    def gblk(whh, k):        # transposed gate block: rows = gate out, cols = h in
        return whh[:, k * D:(k + 1) * D].T

    rows = [
        row_block(gblk(whh_f, 0), Zdd, v_f[0:D, None], zcol),            # r_f
        row_block(Zdd, gblk(whh_b, 0), zcol, v_b[0:D, None]),            # r_b
        row_block(gblk(whh_f, 1), Zdd, v_f[D:2 * D, None], zcol),        # z_f
        row_block(Zdd, gblk(whh_b, 1), zcol, v_b[D:2 * D, None]),        # z_b
        row_block(gblk(whh_f, 2), Zdd, zcol, zcol),                      # hn_f
        row_block(Zdd, gblk(whh_b, 2), zcol, zcol),                      # hn_b
        row_block(Zdd, Zdd, v_f[2 * D:3 * D, None], zcol),               # xn_f
        row_block(Zdd, Zdd, zcol, v_b[2 * D:3 * D, None]),               # xn_b
    ]
    W = jnp.concatenate(rows, axis=0)                                    # (8D, 2D+8)

    bias = jnp.concatenate([
        c_f[0:D] + bh_f[0:D],         c_b[0:D] + bh_b[0:D],
        c_f[D:2 * D] + bh_f[D:2 * D], c_b[D:2 * D] + bh_b[D:2 * D],
        bh_f[2 * D:3 * D],            bh_b[2 * D:3 * D],
        c_f[2 * D:3 * D],             c_b[2 * D:3 * D],
    ])[:, None]                                                          # (8D, 1)

    h0 = jnp.concatenate([hidden[0, 0], hidden[1, 0]])[:, None]          # (2D, 1)
    return W, bias, h0


# --------------------------------------------------------------------------
# FeatureExtraction forward (Pallas-backed)
# --------------------------------------------------------------------------
def feature_extraction(x, params):
    B, T, M = x.shape
    D = params['time_w'].shape[0]

    # ---- time branch: sequences of length T, batch = B*M (n = b*M + m) ----
    Wt, bt, h0t = _pack_bigru(params['time_w'], params['time_b'],
                              params['time_rnn'], params['time_hidden'], D)
    xt = jnp.transpose(x, (1, 0, 2)).reshape(T, B * M)                   # (T, B*M)
    yt = bigru(xt, Wt, bt, h0t)                                          # (T, 2D, B*M)
    yt = yt.reshape(T, 2 * D, B, M).transpose(2, 0, 3, 1)                # (B, T, M, 2D)

    # ---- freq branch: sequences of length M, batch = B*T (n = b*T + t) ----
    Wf, bf, h0f = _pack_bigru(params['freq_w'], params['freq_b'],
                              params['freq_rnn'], params['freq_hidden'], D)
    xf = x.reshape(B * T, M).T                                           # (M, B*T)
    yf = bigru(xf, Wf, bf, h0f)                                          # (M, 2D, B*T)
    yf = yf.reshape(M, 2 * D, B, T).transpose(2, 3, 0, 1)                # (B, T, M, 2D)

    # TODO(synk): x.register_hook(self.hook) is an autograd backward hook; no forward equivalent.
    return jnp.concatenate([yt, yf], axis=3)                             # (B, T, M, 4D)


# --------------------------------------------------------------------------
# Pure-JAX reference (mirrors the PyTorch module exactly)
# --------------------------------------------------------------------------
def _gru_ref_dir(x_tm, wih, whh, bih, bhh, h0, D):
    def step(h, xt):
        gi = xt @ wih + bih
        gh = h @ whh + bhh
        r = jax.nn.sigmoid(gi[:, :D] + gh[:, :D])
        z = jax.nn.sigmoid(gi[:, D:2 * D] + gh[:, D:2 * D])
        n = jnp.tanh(gi[:, 2 * D:] + r * gh[:, 2 * D:])
        h = (1.0 - z) * n + z * h
        return h, h
    _, ys = lax.scan(step, h0, x_tm)
    return ys


def _bigru_ref(x_tm, p, h0f, h0b, D):
    yf = _gru_ref_dir(x_tm, p['wih_f'], p['whh_f'], p['bih_f'], p['bhh_f'], h0f, D)
    yb = _gru_ref_dir(x_tm[::-1], p['wih_b'], p['whh_b'], p['bih_b'], p['bhh_b'], h0b, D)[::-1]
    return jnp.concatenate([yf, yb], axis=-1)


def feature_extraction_ref(x, params):
    B, T, M = x.shape
    D = params['time_w'].shape[0]
    x_time = x[..., None] * params['time_w'] + params['time_b']
    x_freq = x[..., None] * params['freq_w'] + params['freq_b']

    xt_tm = jnp.transpose(jnp.transpose(x_time, (0, 2, 1, 3)).reshape(B * M, T, D), (1, 0, 2))
    yt = _bigru_ref(xt_tm, params['time_rnn'],
                    jnp.broadcast_to(params['time_hidden'][0], (B * M, D)),
                    jnp.broadcast_to(params['time_hidden'][1], (B * M, D)), D)
    yt = jnp.transpose(jnp.transpose(yt, (1, 0, 2)).reshape(B, M, T, 2 * D), (0, 2, 1, 3))

    xf_tm = jnp.transpose(x_freq.reshape(B * T, M, D), (1, 0, 2))
    yf = _bigru_ref(xf_tm, params['freq_rnn'],
                    jnp.broadcast_to(params['freq_hidden'][0], (B * T, D)),
                    jnp.broadcast_to(params['freq_hidden'][1], (B * T, D)), D)
    yf = jnp.transpose(yf, (1, 0, 2)).reshape(B, T, M, 2 * D)
    return jnp.concatenate([yt, yf], axis=3)


# --------------------------------------------------------------------------
# Deterministic parameter init (shapes follow the PyTorch module __init__)
# --------------------------------------------------------------------------
def init_params(key, dims):
    scale = 0.1

    def rnd(k, shape):
        return scale * jax.random.normal(k, shape, jnp.float32)

    def gru_params(k):
        ks = jax.random.split(k, 8)
        # gate order along the 3*dims axis is (r, z, n), matching PyTorch GRU.
        return {
            'wih_f': rnd(ks[0], (dims, 3 * dims)), 'whh_f': rnd(ks[1], (dims, 3 * dims)),
            'bih_f': rnd(ks[2], (1, 3 * dims)),    'bhh_f': rnd(ks[3], (1, 3 * dims)),
            'wih_b': rnd(ks[4], (dims, 3 * dims)), 'whh_b': rnd(ks[5], (dims, 3 * dims)),
            'bih_b': rnd(ks[6], (1, 3 * dims)),    'bhh_b': rnd(ks[7], (1, 3 * dims)),
        }

    ks = jax.random.split(key, 6)
    return {
        'time_w': rnd(ks[0], (dims,)), 'time_b': rnd(ks[1], (dims,)),   # Linear(1, dims)
        'freq_w': rnd(ks[2], (dims,)), 'freq_b': rnd(ks[3], (dims,)),   # Linear(1, dims)
        'time_rnn': gru_params(ks[4]),
        'freq_rnn': gru_params(ks[5]),
        'time_hidden': jnp.zeros((2, 1, dims), jnp.float32),            # nn.Parameter(zeros)
        'freq_hidden': jnp.zeros((2, 1, dims), jnp.float32),            # nn.Parameter(zeros)
    }


if __name__ == "__main__":
    B, T, M, dims = 2, 8, 16, 32
    key = jax.random.PRNGKey(0)
    kx, kp = jax.random.split(key)
    x = jax.random.normal(kx, (B, T, M), jnp.float32)
    params = init_params(kp, dims)

    out = jax.block_until_ready(jax.jit(feature_extraction)(x, params))
    ref = jax.block_until_ready(feature_extraction_ref(x, params))

    assert out.shape == (B, T, M, 4 * dims), out.shape
    np.testing.assert_allclose(np.asarray(out), np.asarray(ref), rtol=1e-4, atol=1e-4)
    print("KERNEL_OK")
</pallas_src>

<mosaic_0001>
module attributes {stable_mosaic.version = 11 : i64} {
  func.func @_bigru_kernel(%arg0: i32, %arg1: memref<8x8x32xf32, #tpu.memory_space<vmem>>, %arg2: memref<256x72xf32, #tpu.memory_space<vmem>>, %arg3: memref<256x1xf32, #tpu.memory_space<vmem>>, %arg4: memref<64x1xf32, #tpu.memory_space<vmem>>, %arg5: memref<8x64x32xf32, #tpu.memory_space<vmem>>) attributes {dimension_semantics = [#tpu.dimension_semantics<parallel>], iteration_bounds = array<i64: 1>, scalar_prefetch = 0 : i64, scratch_operands = 0 : i64, tpu.core_type = #tpu.core_type<tc>, window_params = [{transform_indices = @transform_0, window_bounds = array<i64: 8, 8, 32>}, {pipeline_mode = #tpu.pipeline_mode<synchronous>, transform_indices = @transform_1, window_bounds = array<i64: 256, 72>}, {pipeline_mode = #tpu.pipeline_mode<synchronous>, transform_indices = @transform_2, window_bounds = array<i64: 256, 1>}, {pipeline_mode = #tpu.pipeline_mode<synchronous>, transform_indices = @transform_3, window_bounds = array<i64: 64, 1>}, {transform_indices = @transform_4, window_bounds = array<i64: 8, 64, 32>}]} {
    %c0 = arith.constant 0 : index
    %c0_0 = arith.constant 0 : index
    %0 = vector.load %arg2[%c0, %c0_0] : memref<256x72xf32, #tpu.memory_space<vmem>>, vector<256x72xf32>
    %c0_1 = arith.constant 0 : index
    %c0_2 = arith.constant 0 : index
    %1 = vector.load %arg3[%c0_1, %c0_2] : memref<256x1xf32, #tpu.memory_space<vmem>>, vector<256x1xf32>
    %c0_3 = arith.constant 0 : index
    %c0_4 = arith.constant 0 : index
    %2 = vector.load %arg4[%c0_3, %c0_4] : memref<64x1xf32, #tpu.memory_space<vmem>>, vector<64x1xf32>
    %3 = vector.shape_cast %2 : vector<64x1xf32> to vector<64x1xf32>
    %4 = vector.broadcast %3 : vector<64x1xf32> to vector<64x32xf32>
    %c0_i32 = arith.constant 0 : i32
    %c8_i32 = arith.constant 8 : i32
    %5 = arith.addi %c0_i32, %c8_i32 : i32
    %c1_i32 = arith.constant 1 : i32
    %6 = scf.for %arg6 = %c0_i32 to %5 step %c1_i32 iter_args(%arg7 = %4) -> (vector<64x32xf32>)  : i32 {
      %7 = arith.index_cast %arg6 : i32 to index
      %c0_6 = arith.constant 0 : index
      %c0_7 = arith.constant 0 : index
      %8 = vector.load %arg1[%7, %c0_6, %c0_7] : memref<8x8x32xf32, #tpu.memory_space<vmem>>, vector<1x8x32xf32>
      %9 = vector.shape_cast %8 : vector<1x8x32xf32> to vector<8x32xf32>
      %10 = tpu.concatenate %arg7, %9 in 0 : vector<64x32xf32>, vector<8x32xf32> -> vector<72x32xf32>
      %cst = arith.constant dense<0.000000e+00> : vector<256x32xf32>
      %11 = tpu.matmul %0, %10, %cst {dimension_numbers = #tpu.dot_dimension_numbers<[1], [0], [0], [1], [0, 0, 1, 1], [], []>} : vector<256x72xf32>, vector<72x32xf32>, vector<256x32xf32> -> vector<256x32xf32>
      %12 = vector.broadcast %1 : vector<256x1xf32> to vector<256x32xf32>
      %13 = arith.addf %11, %12 : vector<256x32xf32>
      %14 = vector.extract_strided_slice %13 {offsets = [0, 0], sizes = [128, 32], strides = [1, 1]} : vector<256x32xf32> to vector<128x32xf32>
      %15 = arith.negf %14 : vector<128x32xf32>
      %16 = math.exp %15 : vector<128x32xf32>
      %cst_8 = arith.constant 1.000000e+00 : f32
      %17 = vector.broadcast %cst_8 : f32 to vector<128x32xf32>
      %18 = arith.addf %17, %16 : vector<128x32xf32>
      %19 = arith.divf %17, %18 : vector<128x32xf32>
      %20 = vector.extract_strided_slice %19 {offsets = [0, 0], sizes = [64, 32], strides = [1, 1]} : vector<128x32xf32> to vector<64x32xf32>
      %21 = vector.extract_strided_slice %19 {offsets = [64, 0], sizes = [64, 32], strides = [1, 1]} : vector<128x32xf32> to vector<64x32xf32>
      %22 = vector.extract_strided_slice %13 {offsets = [192, 0], sizes = [64, 32], strides = [1, 1]} : vector<256x32xf32> to vector<64x32xf32>
      %23 = vector.extract_strided_slice %13 {offsets = [128, 0], sizes = [64, 32], strides = [1, 1]} : vector<256x32xf32> to vector<64x32xf32>
      %24 = arith.mulf %20, %23 : vector<64x32xf32>
      %25 = arith.addf %22, %24 : vector<64x32xf32>
      %26 = math.tanh %25 : vector<64x32xf32>
      %cst_9 = arith.constant 1.000000e+00 : f32
      %27 = vector.broadcast %cst_9 : f32 to vector<64x32xf32>
      %28 = arith.subf %27, %21 : vector<64x32xf32>
      %29 = arith.mulf %28, %26 : vector<64x32xf32>
      %30 = arith.mulf %21, %arg7 : vector<64x32xf32>
      %31 = arith.addf %29, %30 : vector<64x32xf32>
      %32 = vector.extract_strided_slice %31 {offsets = [0, 0], sizes = [32, 32], strides = [1, 1]} : vector<64x32xf32> to vector<32x32xf32>
      %33 = arith.index_cast %arg6 : i32 to index
      %c0_10 = arith.constant 0 : index
      %c0_11 = arith.constant 0 : index
      %34 = vector.load %arg5[%33, %c0_10, %c0_11] : memref<8x64x32xf32, #tpu.memory_space<vmem>>, vector<1x32x32xf32>
      %35 = vector.shape_cast %34 : vector<1x32x32xf32> to vector<32x32xf32>
      %36 = vector.shape_cast %32 : vector<32x32xf32> to vector<1x32x32xf32>
      tpu.vector_store %arg5[%33, %c0_10, %c0_11], %36 {strides = array<i32>} : memref<8x64x32xf32, #tpu.memory_space<vmem>>, vector<1x32x32xf32>,
      %37 = vector.extract_strided_slice %31 {offsets = [32, 0], sizes = [32, 32], strides = [1, 1]} : vector<64x32xf32> to vector<32x32xf32>
      %c7_i32 = arith.constant 7 : i32
      %38 = arith.subi %c7_i32, %arg6 : i32
      %39 = arith.index_cast %38 : i32 to index
      %c32 = arith.constant 32 : index
      %c0_12 = arith.constant 0 : index
      %40 = vector.load %arg5[%39, %c32, %c0_12] : memref<8x64x32xf32, #tpu.memory_space<vmem>>, vector<1x32x32xf32>
      %41 = vector.shape_cast %40 : vector<1x32x32xf32> to vector<32x32xf32>
      %42 = vector.shape_cast %37 : vector<32x32xf32> to vector<1x32x32xf32>
      tpu.vector_store %arg5[%39, %c32, %c0_12], %42 {strides = array<i32>} : memref<8x64x32xf32, #tpu.memory_space<vmem>>, vector<1x32x32xf32>,
      scf.yield %31 : vector<64x32xf32>
    }
    %c8_i32_5 = arith.constant 8 : i32
    return
  }
  func.func @transform_0(%arg0: i32) -> (i32, i32, i32) {
    %c0_i32 = arith.constant 0 : i32
    %c0_i32_0 = arith.constant 0 : i32
    %c0_i32_1 = arith.constant 0 : i32
    return %c0_i32, %c0_i32_0, %arg0 : i32, i32, i32
  }
  func.func @transform_1(%arg0: i32) -> (i32, i32) {
    %c0_i32 = arith.constant 0 : i32
    %c0_i32_0 = arith.constant 0 : i32
    %c0_i32_1 = arith.constant 0 : i32
    return %c0_i32, %c0_i32_0 : i32, i32
  }
  func.func @transform_2(%arg0: i32) -> (i32, i32) {
    %c0_i32 = arith.constant 0 : i32
    %c0_i32_0 = arith.constant 0 : i32
    %c0_i32_1 = arith.constant 0 : i32
    return %c0_i32, %c0_i32_0 : i32, i32
  }
  func.func @transform_3(%arg0: i32) -> (i32, i32) {
    %c0_i32 = arith.constant 0 : i32
    %c0_i32_0 = arith.constant 0 : i32
    %c0_i32_1 = arith.constant 0 : i32
    return %c0_i32, %c0_i32_0 : i32, i32
  }
  func.func @transform_4(%arg0: i32) -> (i32, i32, i32) {
    %c0_i32 = arith.constant 0 : i32
    %c0_i32_0 = arith.constant 0 : i32
    %c0_i32_1 = arith.constant 0 : i32
    return %c0_i32, %c0_i32_0, %arg0 : i32, i32, i32
  }
}

module attributes {stable_mosaic.version = 11 : i64} {
  func.func @_bigru_kernel(%arg0: i32, %arg1: memref<16x8x16xf32, #tpu.memory_space<vmem>>, %arg2: memref<256x72xf32, #tpu.memory_space<vmem>>, %arg3: memref<256x1xf32, #tpu.memory_space<vmem>>, %arg4: memref<64x1xf32, #tpu.memory_space<vmem>>, %arg5: memref<16x64x16xf32, #tpu.memory_space<vmem>>) attributes {dimension_semantics = [#tpu.dimension_semantics<parallel>], iteration_bounds = array<i64: 1>, scalar_prefetch = 0 : i64, scratch_operands = 0 : i64, tpu.core_type = #tpu.core_type<tc>, window_params = [{transform_indices = @transform_0, window_bounds = array<i64: 16, 8, 16>}, {pipeline_mode = #tpu.pipeline_mode<synchronous>, transform_indices = @transform_1, window_bounds = array<i64: 256, 72>}, {pipeline_mode = #tpu.pipeline_mode<synchronous>, transform_indices = @transform_2, window_bounds = array<i64: 256, 1>}, {pipeline_mode = #tpu.pipeline_mode<synchronous>, transform_indices = @transform_3, window_bounds = array<i64: 64, 1>}, {transform_indices = @transform_4, window_bounds = array<i64: 16, 64, 16>}]} {
    %c0 = arith.constant 0 : index
    %c0_0 = arith.constant 0 : index
    %0 = vector.load %arg2[%c0, %c0_0] : memref<256x72xf32, #tpu.memory_space<vmem>>, vector<256x72xf32>
    %c0_1 = arith.constant 0 : index
    %c0_2 = arith.constant 0 : index
    %1 = vector.load %arg3[%c0_1, %c0_2] : memref<256x1xf32, #tpu.memory_space<vmem>>, vector<256x1xf32>
    %c0_3 = arith.constant 0 : index
    %c0_4 = arith.constant 0 : index
    %2 = vector.load %arg4[%c0_3, %c0_4] : memref<64x1xf32, #tpu.memory_space<vmem>>, vector<64x1xf32>
    %3 = vector.shape_cast %2 : vector<64x1xf32> to vector<64x1xf32>
    %4 = vector.broadcast %3 : vector<64x1xf32> to vector<64x16xf32>
    %c0_i32 = arith.constant 0 : i32
    %c16_i32 = arith.constant 16 : i32
    %5 = arith.addi %c0_i32, %c16_i32 : i32
    %c1_i32 = arith.constant 1 : i32
    %6 = scf.for %arg6 = %c0_i32 to %5 step %c1_i32 iter_args(%arg7 = %4) -> (vector<64x16xf32>)  : i32 {
      %7 = arith.index_cast %arg6 : i32 to index
      %c0_6 = arith.constant 0 : index
      %c0_7 = arith.constant 0 : index
      %8 = vector.load %arg1[%7, %c0_6, %c0_7] : memref<16x8x16xf32, #tpu.memory_space<vmem>>, vector<1x8x16xf32>
      %9 = vector.shape_cast %8 : vector<1x8x16xf32> to vector<8x16xf32>
      %10 = tpu.concatenate %arg7, %9 in 0 : vector<64x16xf32>, vector<8x16xf32> -> vector<72x16xf32>
      %cst = arith.constant dense<0.000000e+00> : vector<256x16xf32>
      %11 = tpu.matmul %0, %10, %cst {dimension_numbers = #tpu.dot_dimension_numbers<[1], [0], [0], [1], [0, 0, 1, 1], [], []>} : vector<256x72xf32>, vector<72x16xf32>, vector<256x16xf32> -> vector<256x16xf32>
      %12 = vector.broadcast %1 : vector<256x1xf32> to vector<256x16xf32>
      %13 = arith.addf %11, %12 : vector<256x16xf32>
      %14 = vector.extract_strided_slice %13 {offsets = [0, 0], sizes = [128, 16], strides = [1, 1]} : vector<256x16xf32> to vector<128x16xf32>
      %15 = arith.negf %14 : vector<128x16xf32>
      %16 = math.exp %15 : vector<128x16xf32>
      %cst_8 = arith.constant 1.000000e+00 : f32
      %17 = vector.broadcast %cst_8 : f32 to vector<128x16xf32>
      %18 = arith.addf %17, %16 : vector<128x16xf32>
      %19 = arith.divf %17, %18 : vector<128x16xf32>
      %20 = vector.extract_strided_slice %19 {offsets = [0, 0], sizes = [64, 16], strides = [1, 1]} : vector<128x16xf32> to vector<64x16xf32>
      %21 = vector.extract_strided_slice %19 {offsets = [64, 0], sizes = [64, 16], strides = [1, 1]} : vector<128x16xf32> to vector<64x16xf32>
      %22 = vector.extract_strided_slice %13 {offsets = [192, 0], sizes = [64, 16], strides = [1, 1]} : vector<256x16xf32> to vector<64x16xf32>
      %23 = vector.extract_strided_slice %13 {offsets = [128, 0], sizes = [64, 16], strides = [1, 1]} : vector<256x16xf32> to vector<64x16xf32>
      %24 = arith.mulf %20, %23 : vector<64x16xf32>
      %25 = arith.addf %22, %24 : vector<64x16xf32>
      %26 = math.tanh %25 : vector<64x16xf32>
      %cst_9 = arith.constant 1.000000e+00 : f32
      %27 = vector.broadcast %cst_9 : f32 to vector<64x16xf32>
      %28 = arith.subf %27, %21 : vector<64x16xf32>
      %29 = arith.mulf %28, %26 : vector<64x16xf32>
      %30 = arith.mulf %21, %arg7 : vector<64x16xf32>
      %31 = arith.addf %29, %30 : vector<64x16xf32>
      %32 = vector.extract_strided_slice %31 {offsets = [0, 0], sizes = [32, 16], strides = [1, 1]} : vector<64x16xf32> to vector<32x16xf32>
      %33 = arith.index_cast %arg6 : i32 to index
      %c0_10 = arith.constant 0 : index
      %c0_11 = arith.constant 0 : index
      %34 = vector.load %arg5[%33, %c0_10, %c0_11] : memref<16x64x16xf32, #tpu.memory_space<vmem>>, vector<1x32x16xf32>
      %35 = vector.shape_cast %34 : vector<1x32x16xf32> to vector<32x16xf32>
      %36 = vector.shape_cast %32 : vector<32x16xf32> to vector<1x32x16xf32>
      tpu.vector_store %arg5[%33, %c0_10, %c0_11], %36 {strides = array<i32>} : memref<16x64x16xf32, #tpu.memory_space<vmem>>, vector<1x32x16xf32>,
      %37 = vector.extract_strided_slice %31 {offsets = [32, 0], sizes = [32, 16], strides = [1, 1]} : vector<64x16xf32> to vector<32x16xf32>
      %c15_i32 = arith.constant 15 : i32
      %38 = arith.subi %c15_i32, %arg6 : i32
      %39 = arith.index_cast %38 : i32 to index
      %c32 = arith.constant 32 : index
      %c0_12 = arith.constant 0 : index
      %40 = vector.load %arg5[%39, %c32, %c0_12] : memref<16x64x16xf32, #tpu.memory_space<vmem>>, vector<1x32x16xf32>
      %41 = vector.shape_cast %40 : vector<1x32x16xf32> to vector<32x16xf32>
      %42 = vector.shape_cast %37 : vector<32x16xf32> to vector<1x32x16xf32>
      tpu.vector_store %arg5[%39, %c32, %c0_12], %42 {strides = array<i32>} : memref<16x64x16xf32, #tpu.memory_space<vmem>>, vector<1x32x16xf32>,
      scf.yield %31 : vector<64x16xf32>
    }
    %c16_i32_5 = arith.constant 16 : i32
    return
  }
  func.func @transform_0(%arg0: i32) -> (i32, i32, i32) {
    %c0_i32 = arith.constant 0 : i32
    %c0_i32_0 = arith.constant 0 : i32
    %c0_i32_1 = arith.constant 0 : i32
    return %c0_i32, %c0_i32_0, %arg0 : i32, i32, i32
  }
  func.func @transform_1(%arg0: i32) -> (i32, i32) {
    %c0_i32 = arith.constant 0 : i32
    %c0_i32_0 = arith.constant 0 : i32
    %c0_i32_1 = arith.constant 0 : i32
    return %c0_i32, %c0_i32_0 : i32, i32
  }
  func.func @transform_2(%arg0: i32) -> (i32, i32) {
    %c0_i32 = arith.constant 0 : i32
    %c0_i32_0 = arith.constant 0 : i32
    %c0_i32_1 = arith.constant 0 : i32
    return %c0_i32, %c0_i32_0 : i32, i32
  }
  func.func @transform_3(%arg0: i32) -> (i32, i32) {
    %c0_i32 = arith.constant 0 : i32
    %c0_i32_0 = arith.constant 0 : i32
    %c0_i32_1 = arith.constant 0 : i32
    return %c0_i32, %c0_i32_0 : i32, i32
  }
  func.func @transform_4(%arg0: i32) -> (i32, i32, i32) {
    %c0_i32 = arith.constant 0 : i32
    %c0_i32_0 = arith.constant 0 : i32
    %c0_i32_1 = arith.constant 0 : i32
    return %c0_i32, %c0_i32_0, %arg0 : i32, i32, i32
  }
}

</mosaic_0001>

<bundles_post_ra>
// kernel: feature_extraction.2
= control target key start
LH: loop header
LB: loop body
LE: loop exit
PB: predicated region body
PF: predicated region fallthrough
CT: control target
= control target key end

     0   :  { %v1239_v0 = vmov 0   ;;  %s1905_s3 = inlined_call_operand.vmem [shape: f32[64,1], index: 3, kind: input, shape index: {}]   ;;  %s1906_s1 = inlined_call_operand.vmem [shape: f32[256,72], index: 1, kind: input, shape index: {}]   ;;  %s1907_s0 = inlined_call_operand.vmem [shape: f32[8,8,32], index: 0, kind: input, shape index: {}]   ;;  %s1908_s4 = inlined_call_operand.vmem [shape: f32[8,64,32], index: 4, kind: output, shape index: {}]   ;;  %s1909_s2 = inlined_call_operand.vmem [shape: f32[256,1], index: 2, kind: input, shape index: {}]  }
   0x1   :  { %1084 = vset.pattern.permute.xlu1 %v1239_v0  ;;  %1083 = vset.pattern.permute.xlu0 %v1239_v0  ;;  %v83_v1 = vld [vmem:[%s1905_s3 + $0x10] sm:$0xff]  ;;  %v81_v2 = vld [vmem:[%s1905_s3] sm:$0xff]  ;;  %v84_v3 = vld [vmem:[%s1905_s3 + $0x18] sm:$0xff] }
   0x2   :  { %101 = vperm.xlu1 %1084, %v83_v1   ;;  %91 = vperm.xlu0 %1083, %v81_v2   ;;  %v82_v4 = vld [vmem:[%s1905_s3 + $0x8] sm:$0xff]  ;;  %v85_v6 = vld [vmem:[%s1905_s3 + $0x20] sm:$0xff]  ;;  %v88_v7 = vld [vmem:[%s1905_s3 + $0x38] sm:$0xff] }
   0x3   :  { %v86_v5 = vld [vmem:[%s1905_s3 + $0x28] sm:$0xff]  ;;  %v87_v8 = vld [vmem:[%s1905_s3 + $0x30] sm:$0xff]  ;;  %v1293_v9 = vld [vmem:[%s1906_s1] sm:$0xff] }
   0x4   :  { %1910 = vst [vmem:[#allocation2_spill] sm:$0xff] %v1293_v9  ;;  %v1298_v10 = vld [vmem:[%s1906_s1 + $0x8] sm:$0xff]  ;;  %v1303_v11 = vld [vmem:[%s1906_s1 + $0x10] sm:$0xff]  ;;  %v1308_v12 = vld [vmem:[%s1906_s1 + $0x18] sm:$0xff] }
   0x5   :  { %1911 = vst [vmem:[#allocation3_spill] sm:$0xff] %v1298_v10  ;;  %1912 = vst [vmem:[#allocation4_spill] sm:$0xff] %v1303_v11  ;;  %v1313_v13 = vld [vmem:[%s1906_s1 + $0x20] sm:$0xff]  ;;  %v1318_v14 = vld [vmem:[%s1906_s1 + $0x28] sm:$0xff] }
   0x6   :  { %106 = vperm.xlu1 %1084, %v84_v3   ;;  %96 = vperm.xlu0 %1083, %v82_v4   ;;  %1913 = vst [vmem:[#allocation5_spill] sm:$0xff] %v1308_v12  ;;  %1914 = vst [vmem:[#allocation6_spill] sm:$0xff] %v1313_v13  ;;  %v1323_v15 = vld [vmem:[%s1906_s1 + $0x30] sm:$0xff]  ;;  %v1328_v16 = vld [vmem:[%s1906_s1 + $0x38] sm:$0xff] }
   0x7   :  { %1915 = vst [vmem:[#allocation7_spill] sm:$0xff] %v1318_v14  ;;  %1916 = vst [vmem:[#allocation8_spill] sm:$0xff] %v1323_v15  ;;  %v1333_v17 = vld [vmem:[%s1906_s1 + $0x40] sm:$0xff]  ;;  %v1338_v18 = vld [vmem:[%s1906_s1 + $0x48] sm:$0xff] }
   0x8   :  { %1917 = vst [vmem:[#allocation9_spill] sm:$0xff] %v1328_v16  ;;  %1918 = vst [vmem:[#allocation10_spill] sm:$0xff] %v1333_v17  ;;  %v1343_v19 = vld [vmem:[%s1906_s1 + $0x50] sm:$0xff]  ;;  %v1348_v20 = vld [vmem:[%s1906_s1 + $0x58] sm:$0xff] }
   0x9   :  { %1919 = vst [vmem:[#allocation11_spill] sm:$0xff] %v1338_v18  ;;  %1920 = vst [vmem:[#allocation12_spill] sm:$0xff] %v1343_v19  ;;  %v1353_v21 = vld [vmem:[%s1906_s1 + $0x60] sm:$0xff]  ;;  %v1358_v22 = vld [vmem:[%s1906_s1 + $0x68] sm:$0xff] }
   0xa   :  { %116 = vperm.xlu1 %1084, %v86_v5   ;;  %111 = vperm.xlu0 %1083, %v85_v6   ;;  %1921 = vst [vmem:[#allocation13_spill] sm:$0xff] %v1348_v20  ;;  %1922 = vst [vmem:[#allocation14_spill] sm:$0xff] %v1353_v21  ;;  %v1363_v23 = vld [vmem:[%s1906_s1 + $0x70] sm:$0xff]  ;;  %v1368_v24 = vld [vmem:[%s1906_s1 + $0x78] sm:$0xff] }
   0xb   :  { %1923 = vst [vmem:[#allocation15_spill] sm:$0xff] %v1358_v22  ;;  %1924 = vst [vmem:[#allocation16_spill] sm:$0xff] %v1363_v23  ;;  %v1373_v25 = vld [vmem:[%s1906_s1 + $0x80] sm:$0xff]  ;;  %v1378_v26 = vld [vmem:[%s1906_s1 + $0x88] sm:$0xff] }
   0xc   :  { %1925 = vst [vmem:[#allocation17_spill] sm:$0xff] %v1368_v24  ;;  %1926 = vst [vmem:[#allocation18_spill] sm:$0xff] %v1373_v25  ;;  %v1383_v27 = vld [vmem:[%s1906_s1 + $0x90] sm:$0xff]  ;;  %v1388_v28 = vld [vmem:[%s1906_s1 + $0x98] sm:$0xff] }
   0xd   :  { %1927 = vst [vmem:[#allocation19_spill] sm:$0xff] %v1378_v26  ;;  %1928 = vst [vmem:[#allocation20_spill] sm:$0xff] %v1383_v27  ;;  %v1393_v29 = vld [vmem:[%s1906_s1 + $0xa0] sm:$0xff]  ;;  %v1398_v30 = vld [vmem:[%s1906_s1 + $0xa8] sm:$0xff] }
   0xe   :  { %126 = vperm.xlu1 %1084, %v88_v7   ;;  %121 = vperm.xlu0 %1083, %v87_v8   ;;  %1929 = vst [vmem:[#allocation21_spill] sm:$0xff] %v1388_v28  ;;  %1930 = vst [vmem:[#allocation22_spill] sm:$0xff] %v1393_v29  ;;  %v1403_v31 = vld [vmem:[%s1906_s1 + $0xb0] sm:$0xff]  ;;  %v1408_v32 = vld [vmem:[%s1906_s1 + $0xb8] sm:$0xff] }
   0xf   :  { %1931 = vst [vmem:[#allocation23_spill] sm:$0xff] %v1398_v30  ;;  %1932 = vst [vmem:[#allocation24_spill] sm:$0xff] %v1403_v31  ;;  %v1413_v33 = vld [vmem:[%s1906_s1 + $0xc0] sm:$0xff]  ;;  %v1418_v34 = vld [vmem:[%s1906_s1 + $0xc8] sm:$0xff] }
  0x10   :  { %1933 = vst [vmem:[#allocation25_spill] sm:$0xff] %v1408_v32  ;;  %1934 = vst [vmem:[#allocation26_spill] sm:$0xff] %v1413_v33  ;;  %v1423_v35 = vld [vmem:[%s1906_s1 + $0xd0] sm:$0xff]  ;;  %v1428_v36 = vld [vmem:[%s1906_s1 + $0xd8] sm:$0xff] }
  0x11   :  { %1935 = vst [vmem:[#allocation27_spill] sm:$0xff] %v1418_v34  ;;  %1936 = vst [vmem:[#allocation28_spill] sm:$0xff] %v1423_v35  ;;  %v1433_v37 = vld [vmem:[%s1906_s1 + $0xe0] sm:$0xff]  ;;  %v1438_v38 = vld [vmem:[%s1906_s1 + $0xe8] sm:$0xff] }
  0x12   :  { %1937 = vst [vmem:[#allocation29_spill] sm:$0xff] %v1428_v36  ;;  %1938 = vst [vmem:[#allocation30_spill] sm:$0xff] %v1433_v37  ;;  %v1443_v39 = vld [vmem:[%s1906_s1 + $0xf0] sm:$0xff]  ;;  %v1448_v40 = vld [vmem:[%s1906_s1 + $0xf8] sm:$0xff] }
  0x13   :  { %1939 = vst [vmem:[#allocation31_spill] sm:$0xff] %v1438_v38  ;;  %1940 = vst [vmem:[#allocation32_spill] sm:$0xff] %v1443_v39  ;;  %v1453_v41 = vld [vmem:[%s1909_s2] sm:$0xff]  ;;  %v1458_v42 = vld [vmem:[%s1909_s2 + $0x8] sm:$0xff] }
  0x14   :  { %1941 = vst [vmem:[#allocation33_spill] sm:$0xff] %v1448_v40  ;;  %1942 = vst [vmem:[#allocation34_spill] sm:$0xff] %v1453_v41  ;;  %v1463_v43 = vld [vmem:[%s1909_s2 + $0x10] sm:$0xff]  ;;  %v1468_v44 = vld [vmem:[%s1909_s2 + $0x18] sm:$0xff] }
  0x15   :  { %1943 = vst [vmem:[#allocation35_spill] sm:$0xff] %v1458_v42  ;;  %1944 = vst [vmem:[#allocation36_spill] sm:$0xff] %v1463_v43  ;;  %v1473_v45 = vld [vmem:[%s1909_s2 + $0x20] sm:$0xff]  ;;  %v1478_v46 = vld [vmem:[%s1909_s2 + $0x28] sm:$0xff] }
  0x16   :  { %1945 = vst [vmem:[#allocation37_spill] sm:$0xff] %v1468_v44  ;;  %1946 = vst [vmem:[#allocation38_spill] sm:$0xff] %v1473_v45  ;;  %v1483_v47 = vld [vmem:[%s1909_s2 + $0x30] sm:$0xff]  ;;  %v1488_v48 = vld [vmem:[%s1909_s2 + $0x38] sm:$0xff] }
  0x17   :  { %1947 = vst [vmem:[#allocation39_spill] sm:$0xff] %v1478_v46  ;;  %v1493_v49 = vld [vmem:[%s1909_s2 + $0x40] sm:$0xff]  ;;  %v1498_v50 = vld [vmem:[%s1909_s2 + $0x48] sm:$0xff]  ;;  %v1503_v51 = vld [vmem:[%s1909_s2 + $0x50] sm:$0xff] }
  0x18   :  { %v1508_v52 = vld [vmem:[%s1909_s2 + $0x58] sm:$0xff]  ;;  %v1513_v53 = vld [vmem:[%s1909_s2 + $0x60] sm:$0xff]  ;;  %v1518_v54 = vld [vmem:[%s1909_s2 + $0x68] sm:$0xff] }
  0x19   :  { %v1523_v55 = vld [vmem:[%s1909_s2 + $0x70] sm:$0xff]  ;;  %v1528_v56 = vld [vmem:[%s1909_s2 + $0x78] sm:$0xff]  ;;  %v1533_v57 = vld [vmem:[%s1909_s2 + $0x80] sm:$0xff] }
  0x1a   :  { %v1538_v58 = vld [vmem:[%s1909_s2 + $0x88] sm:$0xff]  ;;  %v1543_v59 = vld [vmem:[%s1909_s2 + $0x90] sm:$0xff]  ;;  %v1548_v60 = vld [vmem:[%s1909_s2 + $0x98] sm:$0xff] }
  0x1b   :  { %v1553_v61 = vld [vmem:[%s1909_s2 + $0xa0] sm:$0xff]  ;;  %v1558_v62 = vld [vmem:[%s1909_s2 + $0xa8] sm:$0xff]  ;;  %v1563_v63 = vld [vmem:[%s1909_s2 + $0xb0] sm:$0xff] }
  0x1c   :  { %1948 = vst [vmem:[#allocation40_spill] sm:$0xff] %v1553_v61  ;;  %1949 = vst [vmem:[#allocation41_spill] sm:$0xff] %v1563_v63  ;;  %v1568_v0 = vld [vmem:[%s1909_s2 + $0xb8] sm:$0xff]  ;;  %v1573_v1 = vld [vmem:[%s1909_s2 + $0xc0] sm:$0xff] }
  0x1d   :  { %1950 = vst [vmem:[#allocation42_spill] sm:$0xff] %v1568_v0  ;;  %1951 = vst [vmem:[#allocation43_spill] sm:$0xff] %v1573_v1  ;;  %v1578_v2 = vld [vmem:[%s1909_s2 + $0xc8] sm:$0xff]  ;;  %v1583_v3 = vld [vmem:[%s1909_s2 + $0xd0] sm:$0xff] }
  0x1e   :  { %1952 = vst [vmem:[#allocation44_spill] sm:$0xff] %v1578_v2  ;;  %1953 = vst [vmem:[#allocation45_spill] sm:$0xff] %v1583_v3  ;;  %v1588_v4 = vld [vmem:[%s1909_s2 + $0xd8] sm:$0xff]  ;;  %v1593_v5 = vld [vmem:[%s1909_s2 + $0xe0] sm:$0xff] }
  0x1f   :  { %1954 = vst [vmem:[#allocation46_spill] sm:$0xff] %v1588_v4  ;;  %1955 = vst [vmem:[#allocation47_spill] sm:$0xff] %v1593_v5  ;;  %v1598_v6 = vld [vmem:[%s1909_s2 + $0xe8] sm:$0xff]  ;;  %v1603_v7 = vld [vmem:[%s1909_s2 + $0xf0] sm:$0xff] }
  0x20   :  { %1956 = vst [vmem:[#allocation48_spill] sm:$0xff] %v1598_v6  ;;  %1957 = vst [vmem:[#allocation49_spill] sm:$0xff] %v1603_v7  ;;  %v1608_v8 = vld [vmem:[%s1909_s2 + $0xf8] sm:$0xff]  ;;  %s1626_s2 = smov 0  }
  0x21   :  { %1958 = vst [vmem:[#allocation50_spill] sm:$0xff] %v1608_v8 }
  0x7d   :  { %v102_v3 = vpop.permute.xlu1 %101   ;;  %v92_v4 = vpop.permute.xlu0 %91  }
  0x81   :  { %v107_v1 = vpop.permute.xlu1 %106   ;;  %v97_v2 = vpop.permute.xlu0 %96  }
  0x85   :  { %v117_v5 = vpop.permute.xlu1 %116   ;;  %v112_v63 = vpop.permute.xlu0 %111  }
  0x89   :  { %v127_v0 = vpop.permute.xlu1 %126   ;;  %v122_v61 = vpop.permute.xlu0 %121  }
  0x8a LB: > { %s833_s1 = sshll.u32 %s1237_s2, 3  ;;  %v1240_v7 = vmov 0   ;;  %v1959_v43 = vld [vmem:[#allocation36_spill] sm:$0xff]  ;;  %v1960_v41 = vld [vmem:[#allocation34_spill] sm:$0xff]  ;;  %vm306_vm0 = vcmask 588800   ;;  %v1963_v10 = vld [vmem:[#allocation3_spill] sm:$0xff]  ;;  %s1237_s2 = sphi %s1626_s2, %s134_s2   ;;  %v1233_v4 = vphi %v92_v4, %v772_v4   ;;  %v1229_v2 = vphi %v97_v2, %v773_v2   ;;  %v1225_v3 = vphi %v102_v3, %v774_v3   ;;  %v1221_v1 = vphi %v107_v1, %v775_v1   ;;  %v1217_v63 = vphi %v112_v63, %v776_v63   ;;  %v1213_v5 = vphi %v117_v5, %v777_v5   ;;  %v1209_v61 = vphi %v122_v61, %v778_v61   ;;  %v1205_v0 = vphi %v127_v0, %v779_v0  }
  0x8b   : > { %s144_s24 = scalar_lea.vmem %s1907_s0, %s833_s1  ;;  %1086 = vset.pattern.permute.xlu1 %v1240_v7  ;;  %1085 = vset.pattern.permute.xlu0 %v1240_v7  ;;  %v1961_v9 = vld [vmem:[#allocation2_spill] sm:$0xff]  ;;  %v1964_v26 = vld [vmem:[#allocation19_spill] sm:$0xff]  ;;  %v1965_v44 = vld [vmem:[#allocation37_spill] sm:$0xff]  ;;  %s882_s25 = sshll.u32 %s1237_s2, 6  ;;  %vm782_vm1 = vcmask 261120  }
  0x8c   : > { %v145_v8 = vld [vmem:[%s144_s24] sm:$0xff]  ;;  %158 = vperm.xlu1 %1086, %v1959_v43   ;;  %148 = vperm.xlu0 %1085, %v1960_v41   ;;  %v1966_v42 = vld [vmem:[#allocation35_spill] sm:$0xff]  ;;  %v1967_v11 = vld [vmem:[#allocation4_spill] sm:$0xff]  ;;  %s1861_s28 = scalar_lea.vmem %s1908_s4, %s882_s25  ;;  %s787_s29 = ssub.s32 7, %s1237_s2 }
  0x8d   : > { %925 = vmatprep.subr.mxu0 %v145_v8  ;;  %991 = vmatprep.subr.mxu1 %v145_v8  ;;  %v1962_v25 = vld [vmem:[#allocation18_spill] sm:$0xff]  ;;  %v1968_v27 = vld [vmem:[#allocation20_spill] sm:$0xff]  ;;  %v1969_v12 = vld [vmem:[#allocation5_spill] sm:$0xff]  ;;  %s883_s30 = sshll.u32 %s787_s29, 6  ;;  %s134_s2 = sadd.s32 1, %s1237_s2  }
  0x8e   : > { %926 = vmatpush3.msra.mxu0 %v145_v8  ;;  %1000 = vmatpush3.msra.mxu1 %v145_v8  ;;  %v1970_v28 = vld [vmem:[#allocation21_spill] sm:$0xff]  ;;  %v1971_v46 = vld [vmem:[#allocation39_spill] sm:$0xff]  ;;  %v1972_v45 = vld [vmem:[#allocation38_spill] sm:$0xff]  ;;  %s789_s7 = scalar_lea.vmem %s1908_s4, %s883_s30  ;;  %p131_p0 = scmp.ge.s32.totalorder %s134_s2, 8  }
  0x8f   : > { %927 = vmatprep.subr.mxu0 %v1205_v0  ;;  %992 = vmatprep.subr.mxu1 %v1205_v0  ;;  %v1973_v13 = vld [vmem:[#allocation6_spill] sm:$0xff]  ;;  %v1975_v14 = vld [vmem:[#allocation7_spill] sm:$0xff]  ;;  %v1977_v15 = vld [vmem:[#allocation8_spill] sm:$0xff] }
  0x90   : > { %928 = vmatpush3.msra.mxu0 %v1205_v0  ;;  %1001 = vmatpush3.msra.mxu1 %v1205_v0  ;;  %v1974_v29 = vld [vmem:[#allocation22_spill] sm:$0xff]  ;;  %v1976_v30 = vld [vmem:[#allocation23_spill] sm:$0xff]  ;;  %v1978_v31 = vld [vmem:[#allocation24_spill] sm:$0xff] }
  0x91   : > { %929 = vmatprep.subr.mxu0 %v1209_v61  ;;  %993 = vmatprep.subr.mxu1 %v1209_v61  ;;  %v1979_v16 = vld [vmem:[#allocation9_spill] sm:$0xff]  ;;  %v1981_v17 = vld [vmem:[#allocation10_spill] sm:$0xff]  ;;  %v1983_v18 = vld [vmem:[#allocation11_spill] sm:$0xff] }
  0x92   : > { %930 = vmatpush3.msra.mxu0 %v1209_v61  ;;  %1002 = vmatpush3.msra.mxu1 %v1209_v61  ;;  %v1980_v32 = vld [vmem:[#allocation25_spill] sm:$0xff]  ;;  %v1982_v33 = vld [vmem:[#allocation26_spill] sm:$0xff]  ;;  %v1984_v34 = vld [vmem:[#allocation27_spill] sm:$0xff] }
  0x93   : > { %931 = vmatprep.subr.mxu0 %v1213_v5  ;;  %994 = vmatprep.subr.mxu1 %v1213_v5  ;;  %v1985_v19 = vld [vmem:[#allocation12_spill] sm:$0xff]  ;;  %v1987_v20 = vld [vmem:[#allocation13_spill] sm:$0xff]  ;;  %v1989_v21 = vld [vmem:[#allocation14_spill] sm:$0xff] }
  0x94   : > { %932 = vmatpush3.msra.mxu0 %v1213_v5  ;;  %1003 = vmatpush3.msra.mxu1 %v1213_v5  ;;  %v1986_v35 = vld [vmem:[#allocation28_spill] sm:$0xff]  ;;  %v1988_v36 = vld [vmem:[#allocation29_spill] sm:$0xff]  ;;  %v1990_v37 = vld [vmem:[#allocation30_spill] sm:$0xff] }
  0x95   : > { %933 = vmatprep.subr.mxu0 %v1217_v63  ;;  %995 = vmatprep.subr.mxu1 %v1217_v63  ;;  %v1991_v22 = vld [vmem:[#allocation15_spill] sm:$0xff]  ;;  %v1993_v23 = vld [vmem:[#allocation16_spill] sm:$0xff]  ;;  %v1995_v24 = vld [vmem:[#allocation17_spill] sm:$0xff] }
  0x96   : > { %934 = vmatpush3.msra.mxu0 %v1217_v63  ;;  %1004 = vmatpush3.msra.mxu1 %v1217_v63  ;;  %v1992_v38 = vld [vmem:[#allocation31_spill] sm:$0xff]  ;;  %v1994_v39 = vld [vmem:[#allocation32_spill] sm:$0xff]  ;;  %v1996_v40 = vld [vmem:[#allocation33_spill] sm:$0xff] }
  0x97   : > { %935 = vmatprep.subr.mxu0 %v1221_v1  ;;  %996 = vmatprep.subr.mxu1 %v1221_v1  ;;  %v1997_v7 = vld [vmem:[#allocation40_spill] sm:$0xff]  ;;  %v1998_v8 = vld [vmem:[#allocation42_spill] sm:$0xff] }
  0x98   : > { %936 = vmatpush3.msra.mxu0 %v1221_v1  ;;  %1005 = vmatpush3.msra.mxu1 %v1221_v1  ;;  %v2004_v6 = vld [vmem:[#allocation48_spill] sm:$0xff] }
  0x99   : > { %937 = vmatprep.subr.mxu0 %v1225_v3  ;;  %997 = vmatprep.subr.mxu1 %v1225_v3 }
  0x9a   : > { %938 = vmatpush3.msra.mxu0 %v1225_v3  ;;  %1006 = vmatpush3.msra.mxu1 %v1225_v3 }
  0x9b   : > { %939 = vmatprep.subr.mxu0 %v1229_v2  ;;  %998 = vmatprep.subr.mxu1 %v1229_v2 }
  0x9c   : > { %940 = vmatpush3.msra.mxu0 %v1229_v2  ;;  %1007 = vmatpush3.msra.mxu1 %v1229_v2 }
  0x9d   : > { %941 = vmatprep.subr.mxu0 %v1233_v4  ;;  %999 = vmatprep.subr.mxu1 %v1233_v4 }
  0x9e   : > { %942 = vmatpush3.msra.mxu0 %v1233_v4  ;;  %1008 = vmatpush3.msra.mxu1 %v1233_v4 }
  0x9f   : > { %943 = vmatprep.mubr.msk.f32.mxu0 %vm306_vm0, %v1961_v9  ;;  %967 = vmatprep.mubr.msk.f32.mxu1 %vm306_vm0, %v1962_v25  ;;  %v1999_v9 = vld [vmem:[#allocation41_spill] sm:$0xff] }
  0xa0   : > { %944 = vmatmul.mubr.msk.f32.vlgmr.msra.gmra.mxu0 %vm306_vm0, %v1963_v10  ;;  %968 = vmatmul.mubr.msk.f32.vlgmr.msra.gmra.mxu1 %vm306_vm0, %v1964_v26  ;;  %v2000_v10 = vld [vmem:[#allocation44_spill] sm:$0xff] }
  0xa1   : > { %163 = vperm.xlu1 %1086, %v1965_v44   ;;  %153 = vperm.xlu0 %1085, %v1966_v42  }
  0xa2   : > { %946 = vmatprep.mubr.msk.f32.mxu0 %vm306_vm0, %v1967_v11  ;;  %970 = vmatprep.mubr.msk.f32.mxu1 %vm306_vm0, %v1968_v27  ;;  %v2001_v11 = vld [vmem:[#allocation43_spill] sm:$0xff] }
  0xa4   : > { %947 = vmatmul.mubr.msk.f32.gmra.mxu0 %vm306_vm0, %v1969_v12  ;;  %971 = vmatmul.mubr.msk.f32.gmra.mxu1 %vm306_vm0, %v1970_v28  ;;  %v2002_v12 = vld [vmem:[#allocation46_spill] sm:$0xff] }
  0xa5   : > { %173 = vperm.xlu1 %1086, %v1971_v46   ;;  %168 = vperm.xlu0 %1085, %v1972_v45  }
  0xa6   : > { %949 = vmatprep.mubr.msk.f32.mxu0 %vm306_vm0, %v1973_v13  ;;  %973 = vmatprep.mubr.msk.f32.mxu1 %vm306_vm0, %v1974_v29  ;;  %v2003_v13 = vld [vmem:[#allocation45_spill] sm:$0xff] }
  0xa8   : > { %950 = vmatmul.mubr.msk.f32.gmra.mxu0 %vm306_vm0, %v1975_v14  ;;  %974 = vmatmul.mubr.msk.f32.gmra.mxu1 %vm306_vm0, %v1976_v30  ;;  %v2005_v14 = vld [vmem:[#allocation47_spill] sm:$0xff] }
  0xa9   : > { %183 = vperm.xlu1 %1086, %v1488_v48   ;;  %178 = vperm.xlu0 %1085, %v1483_v47  }
  0xaa   : > { %952 = vmatprep.mubr.msk.f32.mxu0 %vm306_vm0, %v1977_v15  ;;  %976 = vmatprep.mubr.msk.f32.mxu1 %vm306_vm0, %v1978_v31  ;;  %v2006_v15 = vld [vmem:[#allocation50_spill] sm:$0xff] }
  0xac   : > { %953 = vmatmul.mubr.msk.f32.gmra.mxu0 %vm306_vm0, %v1979_v16  ;;  %977 = vmatmul.mubr.msk.f32.gmra.mxu1 %vm306_vm0, %v1980_v32  ;;  %v2007_v16 = vld [vmem:[#allocation49_spill] sm:$0xff] }
  0xad   : > { %193 = vperm.xlu1 %1086, %v1498_v50   ;;  %188 = vperm.xlu0 %1085, %v1493_v49  }
  0xae   : > { %955 = vmatprep.mubr.msk.f32.mxu0 %vm306_vm0, %v1981_v17  ;;  %979 = vmatprep.mubr.msk.f32.mxu1 %vm306_vm0, %v1982_v33 }
  0xb0   : > { %956 = vmatmul.mubr.msk.f32.gmra.mxu0 %vm306_vm0, %v1983_v18  ;;  %980 = vmatmul.mubr.msk.f32.gmra.mxu1 %vm306_vm0, %v1984_v34 }
  0xb1   : > { %203 = vperm.xlu1 %1086, %v1508_v52   ;;  %198 = vperm.xlu0 %1085, %v1503_v51  }
  0xb2   : > { %958 = vmatprep.mubr.msk.f32.mxu0 %vm306_vm0, %v1985_v19  ;;  %982 = vmatprep.mubr.msk.f32.mxu1 %vm306_vm0, %v1986_v35 }
  0xb4   : > { %959 = vmatmul.mubr.msk.f32.gmra.mxu0 %vm306_vm0, %v1987_v20  ;;  %983 = vmatmul.mubr.msk.f32.gmra.mxu1 %vm306_vm0, %v1988_v36 }
  0xb5   : > { %213 = vperm.xlu1 %1086, %v1518_v54   ;;  %208 = vperm.xlu0 %1085, %v1513_v53  }
  0xb6   : > { %961 = vmatprep.mubr.msk.f32.mxu0 %vm306_vm0, %v1989_v21  ;;  %985 = vmatprep.mubr.msk.f32.mxu1 %vm306_vm0, %v1990_v37 }
  0xb8   : > { %962 = vmatmul.mubr.msk.f32.gmra.mxu0 %vm306_vm0, %v1991_v22  ;;  %986 = vmatmul.mubr.msk.f32.gmra.mxu1 %vm306_vm0, %v1992_v38 }
  0xb9   : > { %223 = vperm.xlu1 %1086, %v1528_v56   ;;  %218 = vperm.xlu0 %1085, %v1523_v55  }
  0xba   : > { %964 = vmatprep.mubr.msk.f32.mxu0 %vm306_vm0, %v1993_v23  ;;  %988 = vmatprep.mubr.msk.f32.mxu1 %vm306_vm0, %v1994_v39 }
  0xbc   : > { %965 = vmatmul.mubr.msk.f32.gmra.mxu0 %vm306_vm0, %v1995_v24  ;;  %989 = vmatmul.mubr.msk.f32.gmra.mxu1 %vm306_vm0, %v1996_v40 }
  0xbd   : > { %233 = vperm.xlu1 %1086, %v1538_v58   ;;  %228 = vperm.xlu0 %1085, %v1533_v57  }
  0xc1   : > { %243 = vperm.xlu1 %1086, %v1548_v60   ;;  %238 = vperm.xlu0 %1085, %v1543_v59  }
  0xc5   : > { %253 = vperm.xlu1 %1086, %v1558_v62   ;;  %248 = vperm.xlu0 %1085, %v1997_v7  }
  0xc9   : > { %263 = vperm.xlu1 %1086, %v1998_v8   ;;  %258 = vperm.xlu0 %1085, %v1999_v9  }
  0xcd   : > { %273 = vperm.xlu1 %1086, %v2000_v10   ;;  %268 = vperm.xlu0 %1085, %v2001_v11  }
  0xd1   : > { %283 = vperm.xlu1 %1086, %v2002_v12   ;;  %278 = vperm.xlu0 %1085, %v2003_v13  }
  0xd5   : > { %293 = vperm.xlu1 %1086, %v2004_v6   ;;  %288 = vperm.xlu0 %1085, %v2005_v14  }
  0xd9   : > { %303 = vperm.xlu1 %1086, %v2006_v15   ;;  %298 = vperm.xlu0 %1085, %v2007_v16  }
 0x107   : > { %v159_v7 = vpop.permute.xlu1 %158  ;;  %v149_v8 = vpop.permute.xlu0 %148 }
 0x11c   : > { %v164_v17 = vpop.permute.xlu1 %163  ;;  %v154_v9 = vpop.permute.xlu0 %153 }
 0x120   : > { %v174_v18 = vpop.permute.xlu1 %173  ;;  %v169_v10 = vpop.permute.xlu0 %168 }
 0x124   : > { %v184_v19 = vpop.permute.xlu1 %183  ;;  %v179_v11 = vpop.permute.xlu0 %178 }
 0x128   : > { %v194_v20 = vpop.permute.xlu1 %193  ;;  %v189_v12 = vpop.permute.xlu0 %188 }
 0x12c   : > { %v1787_v21 = vpop.permute.xlu1 %203  ;;  %v1789_v13 = vpop.permute.xlu0 %198 }
 0x130   : > { %v1791_v6 = vpop.permute.xlu1 %213  ;;  %v1793_v14 = vpop.permute.xlu0 %208 }
 0x134   : > { %v1795_v15 = vpop.permute.xlu1 %223  ;;  %v1797_v16 = vpop.permute.xlu0 %218 }
 0x138   : > { %v1803_v27 = vpop.permute.xlu1 %233  ;;  %v1807_v32 = vpop.permute.xlu0 %228 }
 0x13c   : > { %v1813_v39 = vpop.permute.xlu1 %243 }
 0x160   : > { %v945_v22 = vpop.f32.mrf.mxu0  ;;  %v1799_v23 = vpop.f32.mrf.mxu1 }
 0x161   : > { %v475_v24 = vadd.f32 %v945_v22, %v154_v9 }
 0x162   : > { %v469_v25 = vpop.f32.mrf.mxu0  ;;  %v1801_v26 = vpop.f32.mrf.mxu1 }
 0x163   : > { %v867_v28 = vmul.f32 -1.442695, %v475_v24  ;;  %v470_v29 = vadd.f32 %v469_v25, %v149_v8 }
 0x164   : > { %v948_v30 = vpop.f32.mrf.mxu0  ;;  %v1805_v31 = vpop.f32.mrf.mxu1 }
 0x165   : > { %1087 = vpow2.f32 %v867_v28  ;;  %v866_v33 = vmul.f32 -1.442695, %v470_v29  ;;  %v485_v34 = vadd.f32 %v948_v30, %v164_v17  ;;  %v1817_v28 = vpop.permute.xlu0 %238 }
 0x166   : > { %v479_v35 = vpop.f32.mrf.mxu0  ;;  %v1809_v36 = vpop.f32.mrf.mxu1 }
 0x167   : > { %1089 = vpow2.f32 %v866_v33  ;;  %v869_v22 = vmul.f32 -1.442695, %v485_v34  ;;  %v480_v9 = vadd.f32 %v479_v35, %v159_v7 }
 0x168   : > { %v951_v37 = vpop.f32.mrf.mxu0  ;;  %v1811_v38 = vpop.f32.mrf.mxu1 }
 0x169   : > { %1091 = vpow2.f32 %v869_v22  ;;  %v868_v24 = vmul.f32 -1.442695, %v480_v9  ;;  %v495_v25 = vadd.f32 %v951_v37, %v174_v18  ;;  %v1823_v22 = vpop.permute.xlu1 %253  ;;  %v1825_v42 = vpop.permute.xlu0 %248 }
 0x16a   : > { %v489_v8 = vpop.f32.mrf.mxu0  ;;  %v1815_v40 = vpop.f32.mrf.mxu1 }
 0x16b   : > { %1093 = vpow2.f32 %v868_v24  ;;  %v871_v17 = vmul.f32 -1.442695, %v495_v25  ;;  %v490_v29 = vadd.f32 %v489_v8, %v169_v10 }
 0x16c   : > { %v954_v30 = vpop.f32.mrf.mxu0  ;;  %v1819_v33 = vpop.f32.mrf.mxu1 }
 0x16d   : > { %1095 = vpow2.f32 %v871_v17  ;;  %v870_v34 = vmul.f32 -1.442695, %v490_v29  ;;  %v505_v35 = vadd.f32 %v954_v30, %v184_v19  ;;  %v1829_v45 = vpop.permute.xlu1 %263 }
 0x16e   : > { %v499_v7 = vpop.f32.mrf.mxu0  ;;  %v1821_v41 = vpop.f32.mrf.mxu1 }
 0x16f   : > { %1097 = vpow2.f32 %v870_v34  ;;  %v873_v18 = vmul.f32 -1.442695, %v505_v35  ;;  %v500_v37 = vadd.f32 %v499_v7, %v179_v11 }
 0x170   : > { %v957_v9 = vpop.f32.mrf.mxu0  ;;  %v1827_v8 = vpop.f32.mrf.mxu1 }
 0x171   : > { %1099 = vpow2.f32 %v873_v18  ;;  %v872_v24 = vmul.f32 -1.442695, %v500_v37  ;;  %v515_v10 = vadd.f32 %v957_v9, %v194_v20  ;;  %v1832_v37 = vpop.permute.xlu0 %258 }
 0x172   : > { %v1088_v25 = vpop.eup %1087  ;;  %v509_v17 = vpop.f32.mrf.mxu0 }
 0x173   : > { %v677_v29 = vadd.f32 1.0, %v1088_v25  ;;  %1101 = vpow2.f32 %v872_v24  ;;  %v875_v19 = vmul.f32 -1.442695, %v515_v10  ;;  %v510_v30 = vadd.f32 %v509_v17, %v189_v12  ;;  %v589_v20 = vpop.f32.mrf.mxu1 }
 0x174   : > { %v1090_v43 = vpop.eup %1089  ;;  %v960_v44 = vpop.f32.mrf.mxu0 }
 0x175   : > { %1103 = vrcp.f32 %v677_v29  ;;  %v676_v11 = vadd.f32 1.0, %v1090_v43  ;;  %v874_v34 = vmul.f32 -1.442695, %v510_v30  ;;  %v525_v35 = vadd.f32 %v960_v44, %v1787_v21  ;;  %v984_v44 = vpop.f32.mrf.mxu1 }
 0x176   : > { %v1092_v7 = vpop.eup %1091  ;;  %1105 = vpow2.f32 %v875_v19  ;;  %v519_v18 = vpop.f32.mrf.mxu0 }
 0x177   : > { %1107 = vrcp.f32 %v676_v11  ;;  %v679_v9 = vadd.f32 1.0, %v1092_v7  ;;  %v877_v24 = vmul.f32 -1.442695, %v525_v35  ;;  %v520_v12 = vadd.f32 %v519_v18, %v1789_v13  ;;  %v274_v7 = vpop.permute.xlu1 %273 }
 0x178   : > { %v1094_v10 = vpop.eup %1093  ;;  %1109 = vpow2.f32 %v874_v34  ;;  %v963_v25 = vpop.f32.mrf.mxu0 }
 0x179   : > { %1111 = vrcp.f32 %v679_v9  ;;  %v678_v17 = vadd.f32 1.0, %v1094_v10  ;;  %v876_v43 = vmul.f32 -1.442695, %v520_v12  ;;  %v535_v29 = vadd.f32 %v963_v25, %v1791_v6  ;;  %v269_v34 = vpop.permute.xlu0 %268  ;;  %v599_v10 = vpop.f32.mrf.mxu1 }
 0x17a   : > { %v1096_v21 = vpop.eup %1095  ;;  %1113 = vpow2.f32 %v877_v24  ;;  %v529_v19 = vpop.f32.mrf.mxu0 }
 0x17b   : > { %1115 = vrcp.f32 %v678_v17  ;;  %v681_v30 = vadd.f32 1.0, %v1096_v21  ;;  %v879_v46 = vmul.f32 -1.442695, %v535_v29  ;;  %v530_v11 = vadd.f32 %v529_v19, %v1793_v14 }
 0x17c   : > { %v1098_v35 = vpop.eup %1097  ;;  %1117 = vpow2.f32 %v876_v43  ;;  %v966_v13 = vpop.f32.mrf.mxu0  ;;  %v555_v43 = vadd.f32 %v1799_v23, %v1803_v27 }
 0x17d   : > { %1119 = vrcp.f32 %v681_v30  ;;  %v680_v18 = vadd.f32 1.0, %v1098_v35  ;;  %v878_v9 = vmul.f32 -1.442695, %v530_v11  ;;  %v545_v12 = vadd.f32 %v966_v13, %v1795_v15  ;;  %v284_v11 = vpop.permute.xlu1 %283  ;;  %v987_v15 = vpop.f32.mrf.mxu1 }
 0x17e   : > { %v1100_v6 = vpop.eup %1099  ;;  %1121 = vpow2.f32 %v879_v46  ;;  %v539_v24 = vpop.f32.mrf.mxu0  ;;  %v550_v13 = vadd.f32 %v1801_v26, %v1807_v32 }
 0x17f   : > { %1123 = vrcp.f32 %v680_v18  ;;  %v683_v25 = vadd.f32 1.0, %v1100_v6  ;;  %v881_v17 = vmul.f32 -1.442695, %v545_v12  ;;  %v540_v29 = vadd.f32 %v539_v24, %v1797_v16  ;;  %v609_v32 = vpop.f32.mrf.mxu1 }
 0x180   : > { %v1102_v14 = vpop.eup %1101  ;;  %1125 = vpow2.f32 %v878_v9  ;;  %v595_v16 = vadd.f32 %v1827_v8, %v274_v7  ;;  %v279_v9 = vpop.permute.xlu0 %278  ;;  %v565_v6 = vadd.f32 %v1805_v31, %v1813_v39 }
 0x181   : > { %1127 = vrcp.f32 %v683_v25  ;;  %v682_v21 = vadd.f32 1.0, %v1102_v14  ;;  %v880_v19 = vmul.f32 -1.442695, %v540_v29  ;;  %v590_v25 = vadd.f32 %v589_v20, %v269_v34 }
 0x182   : > { %v1104_v30 = vpop.eup %1103  ;;  %1129 = vpow2.f32 %v881_v17  ;;  %v560_v29 = vadd.f32 %v1809_v36, %v1817_v28  ;;  %v600_v36 = vadd.f32 %v599_v10, %v279_v9 }
 0x183   : > { %v1106_v35 = vpop.eup %1105  ;;  %v725_v46 = vmul.f32 %v1104_v30, %v555_v43  ;;  %1131 = vrcp.f32 %v682_v21  ;;  %v605_v43 = vadd.f32 %v984_v44, %v284_v11  ;;  %v575_v30 = vadd.f32 %v1811_v38, %v1823_v22  ;;  %v990_v44 = vpop.f32.mrf.mxu1 }
 0x184   : > { %v1108_v18 = vpop.eup %1107  ;;  %v685_v12 = vadd.f32 1.0, %v1106_v35  ;;  %1133 = vpow2.f32 %v880_v19  ;;  %v294_v19 = vpop.permute.xlu1 %293 }
 0x185   : > { %v1110_v23 = vpop.eup %1109  ;;  %v724_v27 = vmul.f32 %v1108_v18, %v550_v13  ;;  %v733_v24 = vadd.f32 %v725_v46, %v595_v16  ;;  %v289_v35 = vpop.permute.xlu0 %288  ;;  %v570_v46 = vadd.f32 %v1815_v40, %v1825_v42  ;;  %v615_v38 = vadd.f32 %v987_v15, %v294_v19 }
 0x186   : > { %v1112_v17 = vpop.eup %1111  ;;  %1135 = vrcp.f32 %v685_v12  ;;  %v684_v26 = vadd.f32 1.0, %v1110_v23  ;;  %v585_v12 = vadd.f32 %v1819_v33, %v1829_v45 }
 0x187   : > { %v1114_v14 = vpop.eup %1113  ;;  %v727_v8 = vmul.f32 %v1112_v17, %v565_v6  ;;  %1137 = vtanh.f32 %v733_v24  ;;  %v732_v7 = vadd.f32 %v724_v27, %v590_v25  ;;  %v610_v6 = vadd.f32 %v609_v32, %v289_v35  ;;  %v619_v17 = vpop.f32.mrf.mxu1 }
 0x188   : > { %v1116_v21 = vpop.eup %1115  ;;  %1139 = vrcp.f32 %v684_v26  ;;  %v687_v31 = vadd.f32 1.0, %v1114_v14  ;;  %v304_v42 = vpop.permute.xlu1 %303  ;;  %v580_v24 = vadd.f32 %v1821_v41, %v1832_v37 }
 0x189   : > { %v1118_v39 = vpop.eup %1117  ;;  %v726_v20 = vmul.f32 %v1116_v21, %v560_v29  ;;  %1141 = vtanh.f32 %v732_v7  ;;  %v735_v34 = vadd.f32 %v727_v8, %v605_v43  ;;  %v625_v45 = vadd.f32 %v990_v44, %v304_v42  ;;  %v299_v14 = vpop.permute.xlu0 %298 }
 0x18a   : > { %v1120_v28 = vpop.eup %1119  ;;  %1143 = vrcp.f32 %v687_v31  ;;  %v686_v13 = vadd.f32 1.0, %v1118_v39  ;;  %v620_v21 = vadd.f32 %v619_v17, %v299_v14 }
 0x18b   : > { %v1122_v11 = vpop.eup %1121  ;;  %v729_v16 = vmul.f32 %v1120_v28, %v575_v30  ;;  %1145 = vtanh.f32 %v735_v34  ;;  %v734_v18 = vadd.f32 %v726_v20, %v600_v36 }
 0x18c   : > { %v1124_v22 = vpop.eup %1123  ;;  %1147 = vrcp.f32 %v686_v13  ;;  %v689_v23 = vadd.f32 1.0, %v1122_v11 }
 0x18d   : > { %v1126_v10 = vpop.eup %1125  ;;  %v728_v9 = vmul.f32 %v1124_v22, %v570_v46  ;;  %1149 = vtanh.f32 %v734_v18  ;;  %v737_v27 = vadd.f32 %v729_v16, %v615_v38 }
 0x18e   : > { %v1128_v40 = vpop.eup %1127  ;;  %1151 = vrcp.f32 %v689_v23  ;;  %v688_v25 = vadd.f32 1.0, %v1126_v10 }
 0x18f   : > { %v1130_v15 = vpop.eup %1129  ;;  %v731_v29 = vmul.f32 %v1128_v40, %v585_v12  ;;  %1153 = vtanh.f32 %v737_v27  ;;  %v736_v26 = vadd.f32 %v728_v9, %v610_v6 }
 0x190   : > { %v1132_v33 = vpop.eup %1131  ;;  %1155 = vrcp.f32 %v688_v25  ;;  %v691_v8 = vadd.f32 1.0, %v1130_v15 }
 0x191   : > { %v1134_v7 = vpop.eup %1133  ;;  %v730_v32 = vmul.f32 %v1132_v33, %v580_v24  ;;  %1157 = vtanh.f32 %v736_v26  ;;  %v739_v43 = vadd.f32 %v731_v29, %v625_v45 }
 0x192   : > { %1159 = vrcp.f32 %v691_v8  ;;  %v690_v41 = vadd.f32 1.0, %v1134_v7 }
 0x193   : > { %v1136_v37 = vpop.eup %1135  ;;  %1161 = vtanh.f32 %v739_v43  ;;  %v738_v19 = vadd.f32 %v730_v32, %v620_v21 }
 0x194   : > { %v1138_v30 = vpop.eup %1137  ;;  %v749_v31 = vsub.f32 1.0, %v1136_v37  ;;  %1163 = vrcp.f32 %v690_v41  ;;  %v765_v34 = vmul.f32 %v1229_v2, %v1136_v37 }
 0x195   : > { %v1140_v39 = vpop.eup %1139  ;;  %1165 = vtanh.f32 %v738_v19 }
 0x196   : > { %v1142_v20 = vpop.eup %1141  ;;  %v757_v36 = vmul.f32 %v1138_v30, %v749_v31  ;;  %v748_v28 = vsub.f32 1.0, %v1140_v39  ;;  %v764_v13 = vmul.f32 %v1233_v4, %v1140_v39 }
 0x197   : > { %v1144_v35 = vpop.eup %1143 }
 0x198   : > { %v1146_v46 = vpop.eup %1145  ;;  %v773_v2 = vadd.f32 %v765_v34, %v757_v36   ;;  %v756_v44 = vmul.f32 %v1142_v20, %v748_v28  ;;  %v751_v11 = vsub.f32 1.0, %v1144_v35  ;;  %v767_v38 = vmul.f32 %v1221_v1, %v1144_v35 }
 0x199   : > { %v1148_v16 = vpop.eup %1147 }
 0x19a   : > { %v1150_v18 = vpop.eup %1149  ;;  %784 = vst.msk [vmem:[%s1861_s28 + $0x8] sm:$0xff] %vm782_vm1, %v773_v2  ;;  %v772_v4 = vadd.f32 %v764_v13, %v756_v44   ;;  %v759_v22 = vmul.f32 %v1146_v46, %v751_v11  ;;  %v750_v12 = vsub.f32 1.0, %v1148_v16  ;;  %v766_v9 = vmul.f32 %v1225_v3, %v1148_v16 }
 0x19b   : > { %v1152_v23 = vpop.eup %1151 }
 0x19c   : > { %v1154_v10 = vpop.eup %1153  ;;  %783 = vst.msk [vmem:[%s1861_s28] sm:$0xff] %vm782_vm1, %v772_v4  ;;  %v775_v1 = vadd.f32 %v767_v38, %v759_v22   ;;  %v758_v27 = vmul.f32 %v1150_v18, %v750_v12  ;;  %v753_v6 = vsub.f32 1.0, %v1152_v23  ;;  %v769_v24 = vmul.f32 %v1213_v5, %v1152_v23 }
 0x19d   : > { %v1156_v40 = vpop.eup %1155 }
 0x19e   : > { %v1158_v42 = vpop.eup %1157  ;;  %786 = vst.msk [vmem:[%s1861_s28 + $0x18] sm:$0xff] %vm782_vm1, %v775_v1  ;;  %v774_v3 = vadd.f32 %v766_v9, %v758_v27   ;;  %v761_v25 = vmul.f32 %v1154_v10, %v753_v6  ;;  %v752_v17 = vsub.f32 1.0, %v1156_v40  ;;  %v768_v26 = vmul.f32 %v1217_v63, %v1156_v40 }
 0x19f   : > { %v1160_v15 = vpop.eup %1159 }
 0x1a0   : > { %v1162_v29 = vpop.eup %1161  ;;  %785 = vst.msk [vmem:[%s1861_s28 + $0x10] sm:$0xff] %vm782_vm1, %v774_v3  ;;  %v777_v5 = vadd.f32 %v769_v24, %v761_v25   ;;  %v760_v45 = vmul.f32 %v1158_v42, %v752_v17  ;;  %v755_v33 = vsub.f32 1.0, %v1160_v15  ;;  %v771_v7 = vmul.f32 %v1205_v0, %v1160_v15 }
 0x1a1   : > { %v1164_v14 = vpop.eup %1163 }
 0x1a2   : > { %v1166_v8 = vpop.eup %1165  ;;  %791 = vst.msk [vmem:[%s789_s7 + $0x28] sm:$0xff] %vm782_vm1, %v777_v5  ;;  %v776_v63 = vadd.f32 %v768_v26, %v760_v45   ;;  %v763_v32 = vmul.f32 %v1162_v29, %v755_v33  ;;  %v754_v43 = vsub.f32 1.0, %v1164_v14  ;;  %v770_v21 = vmul.f32 %v1209_v61, %v1164_v14 }
 0x1a4   : > { %790 = vst.msk [vmem:[%s789_s7 + $0x20] sm:$0xff] %vm782_vm1, %v776_v63  ;;  %v779_v0 = vadd.f32 %v771_v7, %v763_v32   ;;  %v762_v41 = vmul.f32 %v1166_v8, %v754_v43  ;;  %133 = sbr.rel (!%p131_p0) target bundleno = 138 (0x8a), region = 46 }
 0x1a6   : > { %793 = vst.msk [vmem:[%s789_s7 + $0x38] sm:$0xff] %vm782_vm1, %v779_v0  ;;  %v778_v61 = vadd.f32 %v770_v21, %v762_v41  }
 0x1a8   : > { %792 = vst.msk [vmem:[%s789_s7 + $0x30] sm:$0xff] %vm782_vm1, %v778_v61 }

// kernel: feature_extraction.3
= control target key start
LH: loop header
LB: loop body
LE: loop exit
PB: predicated region body
PF: predicated region fallthrough
CT: control target
= control target key end

     0   :  { %v1239_v0 = vmov 0   ;;  %s1905_s3 = inlined_call_operand.vmem [shape: f32[64,1], index: 3, kind: input, shape index: {}]   ;;  %s1906_s1 = inlined_call_operand.vmem [shape: f32[256,72], index: 1, kind: input, shape index: {}]   ;;  %s1907_s0 = inlined_call_operand.vmem [shape: f32[16,8,16], index: 0, kind: input, shape index: {}]   ;;  %s1908_s4 = inlined_call_operand.vmem [shape: f32[16,64,16], index: 4, kind: output, shape index: {}]   ;;  %s1909_s2 = inlined_call_operand.vmem [shape: f32[256,1], index: 2, kind: input, shape index: {}]  }
   0x1   :  { %1084 = vset.pattern.permute.xlu1 %v1239_v0  ;;  %1083 = vset.pattern.permute.xlu0 %v1239_v0  ;;  %v83_v1 = vld [vmem:[%s1905_s3 + $0x10] sm:$0xff]  ;;  %v81_v2 = vld [vmem:[%s1905_s3] sm:$0xff]  ;;  %v84_v3 = vld [vmem:[%s1905_s3 + $0x18] sm:$0xff] }
   0x2   :  { %101 = vperm.xlu1 %1084, %v83_v1   ;;  %91 = vperm.xlu0 %1083, %v81_v2   ;;  %v82_v4 = vld [vmem:[%s1905_s3 + $0x8] sm:$0xff]  ;;  %v85_v6 = vld [vmem:[%s1905_s3 + $0x20] sm:$0xff]  ;;  %v88_v7 = vld [vmem:[%s1905_s3 + $0x38] sm:$0xff] }
   0x3   :  { %v86_v5 = vld [vmem:[%s1905_s3 + $0x28] sm:$0xff]  ;;  %v87_v8 = vld [vmem:[%s1905_s3 + $0x30] sm:$0xff]  ;;  %v1293_v9 = vld [vmem:[%s1906_s1] sm:$0xff] }
   0x4   :  { %1910 = vst [vmem:[#allocation2_spill] sm:$0xff] %v1293_v9  ;;  %v1298_v10 = vld [vmem:[%s1906_s1 + $0x8] sm:$0xff]  ;;  %v1303_v11 = vld [vmem:[%s1906_s1 + $0x10] sm:$0xff]  ;;  %v1308_v12 = vld [vmem:[%s1906_s1 + $0x18] sm:$0xff] }
   0x5   :  { %1911 = vst [vmem:[#allocation3_spill] sm:$0xff] %v1298_v10  ;;  %1912 = vst [vmem:[#allocation4_spill] sm:$0xff] %v1303_v11  ;;  %v1313_v13 = vld [vmem:[%s1906_s1 + $0x20] sm:$0xff]  ;;  %v1318_v14 = vld [vmem:[%s1906_s1 + $0x28] sm:$0xff] }
   0x6   :  { %106 = vperm.xlu1 %1084, %v84_v3   ;;  %96 = vperm.xlu0 %1083, %v82_v4   ;;  %1913 = vst [vmem:[#allocation5_spill] sm:$0xff] %v1308_v12  ;;  %1914 = vst [vmem:[#allocation6_spill] sm:$0xff] %v1313_v13  ;;  %v1323_v15 = vld [vmem:[%s1906_s1 + $0x30] sm:$0xff]  ;;  %v1328_v16 = vld [vmem:[%s1906_s1 + $0x38] sm:$0xff] }
   0x7   :  { %1915 = vst [vmem:[#allocation7_spill] sm:$0xff] %v1318_v14  ;;  %1916 = vst [vmem:[#allocation8_spill] sm:$0xff] %v1323_v15  ;;  %v1333_v17 = vld [vmem:[%s1906_s1 + $0x40] sm:$0xff]  ;;  %v1338_v18 = vld [vmem:[%s1906_s1 + $0x48] sm:$0xff] }
   0x8   :  { %1917 = vst [vmem:[#allocation9_spill] sm:$0xff] %v1328_v16  ;;  %1918 = vst [vmem:[#allocation10_spill] sm:$0xff] %v1333_v17  ;;  %v1343_v19 = vld [vmem:[%s1906_s1 + $0x50] sm:$0xff]  ;;  %v1348_v20 = vld [vmem:[%s1906_s1 + $0x58] sm:$0xff] }
   0x9   :  { %1919 = vst [vmem:[#allocation11_spill] sm:$0xff] %v1338_v18  ;;  %1920 = vst [vmem:[#allocation12_spill] sm:$0xff] %v1343_v19  ;;  %v1353_v21 = vld [vmem:[%s1906_s1 + $0x60] sm:$0xff]  ;;  %v1358_v22 = vld [vmem:[%s1906_s1 + $0x68] sm:$0xff] }
   0xa   :  { %116 = vperm.xlu1 %1084, %v86_v5   ;;  %111 = vperm.xlu0 %1083, %v85_v6   ;;  %1921 = vst [vmem:[#allocation13_spill] sm:$0xff] %v1348_v20  ;;  %1922 = vst [vmem:[#allocation14_spill] sm:$0xff] %v1353_v21  ;;  %v1363_v23 = vld [vmem:[%s1906_s1 + $0x70] sm:$0xff]  ;;  %v1368_v24 = vld [vmem:[%s1906_s1 + $0x78] sm:$0xff] }
   0xb   :  { %1923 = vst [vmem:[#allocation15_spill] sm:$0xff] %v1358_v22  ;;  %1924 = vst [vmem:[#allocation16_spill] sm:$0xff] %v1363_v23  ;;  %v1373_v25 = vld [vmem:[%s1906_s1 + $0x80] sm:$0xff]  ;;  %v1378_v26 = vld [vmem:[%s1906_s1 + $0x88] sm:$0xff] }
   0xc   :  { %1925 = vst [vmem:[#allocation17_spill] sm:$0xff] %v1368_v24  ;;  %1926 = vst [vmem:[#allocation18_spill] sm:$0xff] %v1373_v25  ;;  %v1383_v27 = vld [vmem:[%s1906_s1 + $0x90] sm:$0xff]  ;;  %v1388_v28 = vld [vmem:[%s1906_s1 + $0x98] sm:$0xff] }
   0xd   :  { %1927 = vst [vmem:[#allocation19_spill] sm:$0xff] %v1378_v26  ;;  %1928 = vst [vmem:[#allocation20_spill] sm:$0xff] %v1383_v27  ;;  %v1393_v29 = vld [vmem:[%s1906_s1 + $0xa0] sm:$0xff]  ;;  %v1398_v30 = vld [vmem:[%s1906_s1 + $0xa8] sm:$0xff] }
   0xe   :  { %126 = vperm.xlu1 %1084, %v88_v7   ;;  %121 = vperm.xlu0 %1083, %v87_v8   ;;  %1929 = vst [vmem:[#allocation21_spill] sm:$0xff] %v1388_v28  ;;  %1930 = vst [vmem:[#allocation22_spill] sm:$0xff] %v1393_v29  ;;  %v1403_v31 = vld [vmem:[%s1906_s1 + $0xb0] sm:$0xff]  ;;  %v1408_v32 = vld [vmem:[%s1906_s1 + $0xb8] sm:$0xff] }
   0xf   :  { %1931 = vst [vmem:[#allocation23_spill] sm:$0xff] %v1398_v30  ;;  %1932 = vst [vmem:[#allocation24_spill] sm:$0xff] %v1403_v31  ;;  %v1413_v33 = vld [vmem:[%s1906_s1 + $0xc0] sm:$0xff]  ;;  %v1418_v34 = vld [vmem:[%s1906_s1 + $0xc8] sm:$0xff] }
  0x10   :  { %1933 = vst [vmem:[#allocation25_spill] sm:$0xff] %v1408_v32  ;;  %1934 = vst [vmem:[#allocation26_spill] sm:$0xff] %v1413_v33  ;;  %v1423_v35 = vld [vmem:[%s1906_s1 + $0xd0] sm:$0xff]  ;;  %v1428_v36 = vld [vmem:[%s1906_s1 + $0xd8] sm:$0xff] }
  0x11   :  { %1935 = vst [vmem:[#allocation27_spill] sm:$0xff] %v1418_v34  ;;  %1936 = vst [vmem:[#allocation28_spill] sm:$0xff] %v1423_v35  ;;  %v1433_v37 = vld [vmem:[%s1906_s1 + $0xe0] sm:$0xff]  ;;  %v1438_v38 = vld [vmem:[%s1906_s1 + $0xe8] sm:$0xff] }
  0x12   :  { %1937 = vst [vmem:[#allocation29_spill] sm:$0xff] %v1428_v36  ;;  %1938 = vst [vmem:[#allocation30_spill] sm:$0xff] %v1433_v37  ;;  %v1443_v39 = vld [vmem:[%s1906_s1 + $0xf0] sm:$0xff]  ;;  %v1448_v40 = vld [vmem:[%s1906_s1 + $0xf8] sm:$0xff] }
  0x13   :  { %1939 = vst [vmem:[#allocation31_spill] sm:$0xff] %v1438_v38  ;;  %1940 = vst [vmem:[#allocation32_spill] sm:$0xff] %v1443_v39  ;;  %v1453_v41 = vld [vmem:[%s1909_s2] sm:$0xff]  ;;  %v1458_v42 = vld [vmem:[%s1909_s2 + $0x8] sm:$0xff] }
  0x14   :  { %1941 = vst [vmem:[#allocation33_spill] sm:$0xff] %v1448_v40  ;;  %1942 = vst [vmem:[#allocation34_spill] sm:$0xff] %v1453_v41  ;;  %v1463_v43 = vld [vmem:[%s1909_s2 + $0x10] sm:$0xff]  ;;  %v1468_v44 = vld [vmem:[%s1909_s2 + $0x18] sm:$0xff] }
  0x15   :  { %1943 = vst [vmem:[#allocation35_spill] sm:$0xff] %v1458_v42  ;;  %1944 = vst [vmem:[#allocation36_spill] sm:$0xff] %v1463_v43  ;;  %v1473_v45 = vld [vmem:[%s1909_s2 + $0x20] sm:$0xff]  ;;  %v1478_v46 = vld [vmem:[%s1909_s2 + $0x28] sm:$0xff] }
  0x16   :  { %1945 = vst [vmem:[#allocation37_spill] sm:$0xff] %v1468_v44  ;;  %1946 = vst [vmem:[#allocation38_spill] sm:$0xff] %v1473_v45  ;;  %v1483_v47 = vld [vmem:[%s1909_s2 + $0x30] sm:$0xff]  ;;  %v1488_v48 = vld [vmem:[%s1909_s2 + $0x38] sm:$0xff] }
  0x17   :  { %1947 = vst [vmem:[#allocation39_spill] sm:$0xff] %v1478_v46  ;;  %v1493_v49 = vld [vmem:[%s1909_s2 + $0x40] sm:$0xff]  ;;  %v1498_v50 = vld [vmem:[%s1909_s2 + $0x48] sm:$0xff]  ;;  %v1503_v51 = vld [vmem:[%s1909_s2 + $0x50] sm:$0xff] }
  0x18   :  { %v1508_v52 = vld [vmem:[%s1909_s2 + $0x58] sm:$0xff]  ;;  %v1513_v53 = vld [vmem:[%s1909_s2 + $0x60] sm:$0xff]  ;;  %v1518_v54 = vld [vmem:[%s1909_s2 + $0x68] sm:$0xff] }
  0x19   :  { %v1523_v55 = vld [vmem:[%s1909_s2 + $0x70] sm:$0xff]  ;;  %v1528_v56 = vld [vmem:[%s1909_s2 + $0x78] sm:$0xff]  ;;  %v1533_v57 = vld [vmem:[%s1909_s2 + $0x80] sm:$0xff] }
  0x1a   :  { %v1538_v58 = vld [vmem:[%s1909_s2 + $0x88] sm:$0xff]  ;;  %v1543_v59 = vld [vmem:[%s1909_s2 + $0x90] sm:$0xff]  ;;  %v1548_v60 = vld [vmem:[%s1909_s2 + $0x98] sm:$0xff] }
  0x1b   :  { %v1553_v61 = vld [vmem:[%s1909_s2 + $0xa0] sm:$0xff]  ;;  %v1558_v62 = vld [vmem:[%s1909_s2 + $0xa8] sm:$0xff]  ;;  %v1563_v63 = vld [vmem:[%s1909_s2 + $0xb0] sm:$0xff] }
  0x1c   :  { %1948 = vst [vmem:[#allocation40_spill] sm:$0xff] %v1553_v61  ;;  %1949 = vst [vmem:[#allocation41_spill] sm:$0xff] %v1563_v63  ;;  %v1568_v0 = vld [vmem:[%s1909_s2 + $0xb8] sm:$0xff]  ;;  %v1573_v1 = vld [vmem:[%s1909_s2 + $0xc0] sm:$0xff] }
  0x1d   :  { %1950 = vst [vmem:[#allocation42_spill] sm:$0xff] %v1568_v0  ;;  %1951 = vst [vmem:[#allocation43_spill] sm:$0xff] %v1573_v1  ;;  %v1578_v2 = vld [vmem:[%s1909_s2 + $0xc8] sm:$0xff]  ;;  %v1583_v3 = vld [vmem:[%s1909_s2 + $0xd0] sm:$0xff] }
  0x1e   :  { %1952 = vst [vmem:[#allocation44_spill] sm:$0xff] %v1578_v2  ;;  %1953 = vst [vmem:[#allocation45_spill] sm:$0xff] %v1583_v3  ;;  %v1588_v4 = vld [vmem:[%s1909_s2 + $0xd8] sm:$0xff]  ;;  %v1593_v5 = vld [vmem:[%s1909_s2 + $0xe0] sm:$0xff] }
  0x1f   :  { %1954 = vst [vmem:[#allocation46_spill] sm:$0xff] %v1588_v4  ;;  %1955 = vst [vmem:[#allocation47_spill] sm:$0xff] %v1593_v5  ;;  %v1598_v6 = vld [vmem:[%s1909_s2 + $0xe8] sm:$0xff]  ;;  %v1603_v7 = vld [vmem:[%s1909_s2 + $0xf0] sm:$0xff] }
  0x20   :  { %1956 = vst [vmem:[#allocation48_spill] sm:$0xff] %v1598_v6  ;;  %1957 = vst [vmem:[#allocation49_spill] sm:$0xff] %v1603_v7  ;;  %v1608_v8 = vld [vmem:[%s1909_s2 + $0xf8] sm:$0xff]  ;;  %s1626_s2 = smov 0  }
  0x21   :  { %1958 = vst [vmem:[#allocation50_spill] sm:$0xff] %v1608_v8 }
  0x7d   :  { %v102_v3 = vpop.permute.xlu1 %101   ;;  %v92_v4 = vpop.permute.xlu0 %91  }
  0x81   :  { %v107_v1 = vpop.permute.xlu1 %106   ;;  %v97_v2 = vpop.permute.xlu0 %96  }
  0x85   :  { %v117_v5 = vpop.permute.xlu1 %116   ;;  %v112_v63 = vpop.permute.xlu0 %111  }
  0x89   :  { %v127_v0 = vpop.permute.xlu1 %126   ;;  %v122_v61 = vpop.permute.xlu0 %121  }
  0x8a LB: > { %s833_s1 = sshll.u32 %s1237_s2, 3  ;;  %v1240_v7 = vmov 0   ;;  %v1959_v43 = vld [vmem:[#allocation36_spill] sm:$0xff]  ;;  %v1960_v41 = vld [vmem:[#allocation34_spill] sm:$0xff]  ;;  %vm306_vm0 = vcmask 588800   ;;  %v1963_v10 = vld [vmem:[#allocation3_spill] sm:$0xff]  ;;  %s1237_s2 = sphi %s1626_s2, %s134_s2   ;;  %v1233_v4 = vphi %v92_v4, %v772_v4   ;;  %v1229_v2 = vphi %v97_v2, %v773_v2   ;;  %v1225_v3 = vphi %v102_v3, %v774_v3   ;;  %v1221_v1 = vphi %v107_v1, %v775_v1   ;;  %v1217_v63 = vphi %v112_v63, %v776_v63   ;;  %v1213_v5 = vphi %v117_v5, %v777_v5   ;;  %v1209_v61 = vphi %v122_v61, %v778_v61   ;;  %v1205_v0 = vphi %v127_v0, %v779_v0  }
  0x8b   : > { %s144_s24 = scalar_lea.vmem %s1907_s0, %s833_s1  ;;  %1086 = vset.pattern.permute.xlu1 %v1240_v7  ;;  %1085 = vset.pattern.permute.xlu0 %v1240_v7  ;;  %v1961_v9 = vld [vmem:[#allocation2_spill] sm:$0xff]  ;;  %v1964_v26 = vld [vmem:[#allocation19_spill] sm:$0xff]  ;;  %v1965_v44 = vld [vmem:[#allocation37_spill] sm:$0xff]  ;;  %s882_s25 = sshll.u32 %s1237_s2, 6  ;;  %vm782_vm1 = vcmask 130048  }
  0x8c   : > { %v145_v8 = vld [vmem:[%s144_s24] sm:$0xff]  ;;  %158 = vperm.xlu1 %1086, %v1959_v43   ;;  %148 = vperm.xlu0 %1085, %v1960_v41   ;;  %v1966_v42 = vld [vmem:[#allocation35_spill] sm:$0xff]  ;;  %v1967_v11 = vld [vmem:[#allocation4_spill] sm:$0xff]  ;;  %s1861_s28 = scalar_lea.vmem %s1908_s4, %s882_s25  ;;  %s787_s29 = ssub.s32 15, %s1237_s2 }
  0x8d   : > { %925 = vmatprep.subr.mxu0 %v145_v8  ;;  %991 = vmatprep.subr.mxu1 %v145_v8  ;;  %v1962_v25 = vld [vmem:[#allocation18_spill] sm:$0xff]  ;;  %v1968_v27 = vld [vmem:[#allocation20_spill] sm:$0xff]  ;;  %v1969_v12 = vld [vmem:[#allocation5_spill] sm:$0xff]  ;;  %s883_s30 = sshll.u32 %s787_s29, 6  ;;  %s134_s2 = sadd.s32 1, %s1237_s2  }
  0x8e   : > { %926 = vmatpush3.msra.mxu0 %v145_v8  ;;  %1000 = vmatpush3.msra.mxu1 %v145_v8  ;;  %v1970_v28 = vld [vmem:[#allocation21_spill] sm:$0xff]  ;;  %v1971_v46 = vld [vmem:[#allocation39_spill] sm:$0xff]  ;;  %v1972_v45 = vld [vmem:[#allocation38_spill] sm:$0xff]  ;;  %s789_s7 = scalar_lea.vmem %s1908_s4, %s883_s30  ;;  %p131_p0 = scmp.ge.s32.totalorder %s134_s2, 16  }
  0x8f   : > { %927 = vmatprep.subr.mxu0 %v1205_v0  ;;  %992 = vmatprep.subr.mxu1 %v1205_v0  ;;  %v1973_v13 = vld [vmem:[#allocation6_spill] sm:$0xff]  ;;  %v1975_v14 = vld [vmem:[#allocation7_spill] sm:$0xff]  ;;  %v1977_v15 = vld [vmem:[#allocation8_spill] sm:$0xff] }
  0x90   : > { %928 = vmatpush3.msra.mxu0 %v1205_v0  ;;  %1001 = vmatpush3.msra.mxu1 %v1205_v0  ;;  %v1974_v29 = vld [vmem:[#allocation22_spill] sm:$0xff]  ;;  %v1976_v30 = vld [vmem:[#allocation23_spill] sm:$0xff]  ;;  %v1978_v31 = vld [vmem:[#allocation24_spill] sm:$0xff] }
  0x91   : > { %929 = vmatprep.subr.mxu0 %v1209_v61  ;;  %993 = vmatprep.subr.mxu1 %v1209_v61  ;;  %v1979_v16 = vld [vmem:[#allocation9_spill] sm:$0xff]  ;;  %v1981_v17 = vld [vmem:[#allocation10_spill] sm:$0xff]  ;;  %v1983_v18 = vld [vmem:[#allocation11_spill] sm:$0xff] }
  0x92   : > { %930 = vmatpush3.msra.mxu0 %v1209_v61  ;;  %1002 = vmatpush3.msra.mxu1 %v1209_v61  ;;  %v1980_v32 = vld [vmem:[#allocation25_spill] sm:$0xff]  ;;  %v1982_v33 = vld [vmem:[#allocation26_spill] sm:$0xff]  ;;  %v1984_v34 = vld [vmem:[#allocation27_spill] sm:$0xff] }
  0x93   : > { %931 = vmatprep.subr.mxu0 %v1213_v5  ;;  %994 = vmatprep.subr.mxu1 %v1213_v5  ;;  %v1985_v19 = vld [vmem:[#allocation12_spill] sm:$0xff]  ;;  %v1987_v20 = vld [vmem:[#allocation13_spill] sm:$0xff]  ;;  %v1989_v21 = vld [vmem:[#allocation14_spill] sm:$0xff] }
  0x94   : > { %932 = vmatpush3.msra.mxu0 %v1213_v5  ;;  %1003 = vmatpush3.msra.mxu1 %v1213_v5  ;;  %v1986_v35 = vld [vmem:[#allocation28_spill] sm:$0xff]  ;;  %v1988_v36 = vld [vmem:[#allocation29_spill] sm:$0xff]  ;;  %v1990_v37 = vld [vmem:[#allocation30_spill] sm:$0xff] }
  0x95   : > { %933 = vmatprep.subr.mxu0 %v1217_v63  ;;  %995 = vmatprep.subr.mxu1 %v1217_v63  ;;  %v1991_v22 = vld [vmem:[#allocation15_spill] sm:$0xff]  ;;  %v1993_v23 = vld [vmem:[#allocation16_spill] sm:$0xff]  ;;  %v1995_v24 = vld [vmem:[#allocation17_spill] sm:$0xff] }
  0x96   : > { %934 = vmatpush3.msra.mxu0 %v1217_v63  ;;  %1004 = vmatpush3.msra.mxu1 %v1217_v63  ;;  %v1992_v38 = vld [vmem:[#allocation31_spill] sm:$0xff]  ;;  %v1994_v39 = vld [vmem:[#allocation32_spill] sm:$0xff]  ;;  %v1996_v40 = vld [vmem:[#allocation33_spill] sm:$0xff] }
  0x97   : > { %935 = vmatprep.subr.mxu0 %v1221_v1  ;;  %996 = vmatprep.subr.mxu1 %v1221_v1  ;;  %v1997_v7 = vld [vmem:[#allocation40_spill] sm:$0xff]  ;;  %v1998_v8 = vld [vmem:[#allocation42_spill] sm:$0xff] }
  0x98   : > { %936 = vmatpush3.msra.mxu0 %v1221_v1  ;;  %1005 = vmatpush3.msra.mxu1 %v1221_v1  ;;  %v2004_v6 = vld [vmem:[#allocation48_spill] sm:$0xff] }
  0x99   : > { %937 = vmatprep.subr.mxu0 %v1225_v3  ;;  %997 = vmatprep.subr.mxu1 %v1225_v3 }
  0x9a   : > { %938 = vmatpush3.msra.mxu0 %v1225_v3  ;;  %1006 = vmatpush3.msra.mxu1 %v1225_v3 }
  0x9b   : > { %939 = vmatprep.subr.mxu0 %v1229_v2  ;;  %998 = vmatprep.subr.mxu1 %v1229_v2 }
  0x9c   : > { %940 = vmatpush3.msra.mxu0 %v1229_v2  ;;  %1007 = vmatpush3.msra.mxu1 %v1229_v2 }
  0x9d   : > { %941 = vmatprep.subr.mxu0 %v1233_v4  ;;  %999 = vmatprep.subr.mxu1 %v1233_v4 }
  0x9e   : > { %942 = vmatpush3.msra.mxu0 %v1233_v4  ;;  %1008 = vmatpush3.msra.mxu1 %v1233_v4 }
  0x9f   : > { %943 = vmatprep.mubr.msk.f32.mxu0 %vm306_vm0, %v1961_v9  ;;  %967 = vmatprep.mubr.msk.f32.mxu1 %vm306_vm0, %v1962_v25  ;;  %v1999_v9 = vld [vmem:[#allocation41_spill] sm:$0xff] }
  0xa0   : > { %944 = vmatmul.mubr.msk.f32.vlgmr.msra.gmra.mxu0 %vm306_vm0, %v1963_v10  ;;  %968 = vmatmul.mubr.msk.f32.vlgmr.msra.gmra.mxu1 %vm306_vm0, %v1964_v26  ;;  %v2000_v10 = vld [vmem:[#allocation44_spill] sm:$0xff] }
  0xa1   : > { %163 = vperm.xlu1 %1086, %v1965_v44   ;;  %153 = vperm.xlu0 %1085, %v1966_v42  }
  0xa2   : > { %946 = vmatprep.mubr.msk.f32.mxu0 %vm306_vm0, %v1967_v11  ;;  %970 = vmatprep.mubr.msk.f32.mxu1 %vm306_vm0, %v1968_v27  ;;  %v2001_v11 = vld [vmem:[#allocation43_spill] sm:$0xff] }
  0xa4   : > { %947 = vmatmul.mubr.msk.f32.gmra.mxu0 %vm306_vm0, %v1969_v12  ;;  %971 = vmatmul.mubr.msk.f32.gmra.mxu1 %vm306_vm0, %v1970_v28  ;;  %v2002_v12 = vld [vmem:[#allocation46_spill] sm:$0xff] }
  0xa5   : > { %173 = vperm.xlu1 %1086, %v1971_v46   ;;  %168 = vperm.xlu0 %1085, %v1972_v45  }
  0xa6   : > { %949 = vmatprep.mubr.msk.f32.mxu0 %vm306_vm0, %v1973_v13  ;;  %973 = vmatprep.mubr.msk.f32.mxu1 %vm306_vm0, %v1974_v29  ;;  %v2003_v13 = vld [vmem:[#allocation45_spill] sm:$0xff] }
  0xa8   : > { %950 = vmatmul.mubr.msk.f32.gmra.mxu0 %vm306_vm0, %v1975_v14  ;;  %974 = vmatmul.mubr.msk.f32.gmra.mxu1 %vm306_vm0, %v1976_v30  ;;  %v2005_v14 = vld [vmem:[#allocation47_spill] sm:$0xff] }
  0xa9   : > { %183 = vperm.xlu1 %1086, %v1488_v48   ;;  %178 = vperm.xlu0 %1085, %v1483_v47  }
  0xaa   : > { %952 = vmatprep.mubr.msk.f32.mxu0 %vm306_vm0, %v1977_v15  ;;  %976 = vmatprep.mubr.msk.f32.mxu1 %vm306_vm0, %v1978_v31  ;;  %v2006_v15 = vld [vmem:[#allocation50_spill] sm:$0xff] }
  0xac   : > { %953 = vmatmul.mubr.msk.f32.gmra.mxu0 %vm306_vm0, %v1979_v16  ;;  %977 = vmatmul.mubr.msk.f32.gmra.mxu1 %vm306_vm0, %v1980_v32  ;;  %v2007_v16 = vld [vmem:[#allocation49_spill] sm:$0xff] }
  0xad   : > { %193 = vperm.xlu1 %1086, %v1498_v50   ;;  %188 = vperm.xlu0 %1085, %v1493_v49  }
  0xae   : > { %955 = vmatprep.mubr.msk.f32.mxu0 %vm306_vm0, %v1981_v17  ;;  %979 = vmatprep.mubr.msk.f32.mxu1 %vm306_vm0, %v1982_v33 }
  0xb0   : > { %956 = vmatmul.mubr.msk.f32.gmra.mxu0 %vm306_vm0, %v1983_v18  ;;  %980 = vmatmul.mubr.msk.f32.gmra.mxu1 %vm306_vm0, %v1984_v34 }
  0xb1   : > { %203 = vperm.xlu1 %1086, %v1508_v52   ;;  %198 = vperm.xlu0 %1085, %v1503_v51  }
  0xb2   : > { %958 = vmatprep.mubr.msk.f32.mxu0 %vm306_vm0, %v1985_v19  ;;  %982 = vmatprep.mubr.msk.f32.mxu1 %vm306_vm0, %v1986_v35 }
  0xb4   : > { %959 = vmatmul.mubr.msk.f32.gmra.mxu0 %vm306_vm0, %v1987_v20  ;;  %983 = vmatmul.mubr.msk.f32.gmra.mxu1 %vm306_vm0, %v1988_v36 }
  0xb5   : > { %213 = vperm.xlu1 %1086, %v1518_v54   ;;  %208 = vperm.xlu0 %1085, %v1513_v53  }
  0xb6   : > { %961 = vmatprep.mubr.msk.f32.mxu0 %vm306_vm0, %v1989_v21  ;;  %985 = vmatprep.mubr.msk.f32.mxu1 %vm306_vm0, %v1990_v37 }
  0xb8   : > { %962 = vmatmul.mubr.msk.f32.gmra.mxu0 %vm306_vm0, %v1991_v22  ;;  %986 = vmatmul.mubr.msk.f32.gmra.mxu1 %vm306_vm0, %v1992_v38 }
  0xb9   : > { %223 = vperm.xlu1 %1086, %v1528_v56   ;;  %218 = vperm.xlu0 %1085, %v1523_v55  }
  0xba   : > { %964 = vmatprep.mubr.msk.f32.mxu0 %vm306_vm0, %v1993_v23  ;;  %988 = vmatprep.mubr.msk.f32.mxu1 %vm306_vm0, %v1994_v39 }
  0xbc   : > { %965 = vmatmul.mubr.msk.f32.gmra.mxu0 %vm306_vm0, %v1995_v24  ;;  %989 = vmatmul.mubr.msk.f32.gmra.mxu1 %vm306_vm0, %v1996_v40 }
  0xbd   : > { %233 = vperm.xlu1 %1086, %v1538_v58   ;;  %228 = vperm.xlu0 %1085, %v1533_v57  }
  0xc1   : > { %243 = vperm.xlu1 %1086, %v1548_v60   ;;  %238 = vperm.xlu0 %1085, %v1543_v59  }
  0xc5   : > { %253 = vperm.xlu1 %1086, %v1558_v62   ;;  %248 = vperm.xlu0 %1085, %v1997_v7  }
  0xc9   : > { %263 = vperm.xlu1 %1086, %v1998_v8   ;;  %258 = vperm.xlu0 %1085, %v1999_v9  }
  0xcd   : > { %273 = vperm.xlu1 %1086, %v2000_v10   ;;  %268 = vperm.xlu0 %1085, %v2001_v11  }
  0xd1   : > { %283 = vperm.xlu1 %1086, %v2002_v12   ;;  %278 = vperm.xlu0 %1085, %v2003_v13  }
  0xd5   : > { %293 = vperm.xlu1 %1086, %v2004_v6   ;;  %288 = vperm.xlu0 %1085, %v2005_v14  }
  0xd9   : > { %303 = vperm.xlu1 %1086, %v2006_v15   ;;  %298 = vperm.xlu0 %1085, %v2007_v16  }
 0x107   : > { %v159_v7 = vpop.permute.xlu1 %158  ;;  %v149_v8 = vpop.permute.xlu0 %148 }
 0x11c   : > { %v164_v17 = vpop.permute.xlu1 %163  ;;  %v154_v9 = vpop.permute.xlu0 %153 }
 0x120   : > { %v174_v18 = vpop.permute.xlu1 %173  ;;  %v169_v10 = vpop.permute.xlu0 %168 }
 0x124   : > { %v184_v19 = vpop.permute.xlu1 %183  ;;  %v179_v11 = vpop.permute.xlu0 %178 }
 0x128   : > { %v194_v20 = vpop.permute.xlu1 %193  ;;  %v189_v12 = vpop.permute.xlu0 %188 }
 0x12c   : > { %v1787_v21 = vpop.permute.xlu1 %203  ;;  %v1789_v13 = vpop.permute.xlu0 %198 }
 0x130   : > { %v1791_v6 = vpop.permute.xlu1 %213  ;;  %v1793_v14 = vpop.permute.xlu0 %208 }
 0x134   : > { %v1795_v15 = vpop.permute.xlu1 %223  ;;  %v1797_v16 = vpop.permute.xlu0 %218 }
 0x138   : > { %v1803_v27 = vpop.permute.xlu1 %233  ;;  %v1807_v32 = vpop.permute.xlu0 %228 }
 0x13c   : > { %v1813_v39 = vpop.permute.xlu1 %243 }
 0x160   : > { %v945_v22 = vpop.f32.mrf.mxu0  ;;  %v1799_v23 = vpop.f32.mrf.mxu1 }
 0x161   : > { %v475_v24 = vadd.f32 %v945_v22, %v154_v9 }
 0x162   : > { %v469_v25 = vpop.f32.mrf.mxu0  ;;  %v1801_v26 = vpop.f32.mrf.mxu1 }
 0x163   : > { %v867_v28 = vmul.f32 -1.442695, %v475_v24  ;;  %v470_v29 = vadd.f32 %v469_v25, %v149_v8 }
 0x164   : > { %v948_v30 = vpop.f32.mrf.mxu0  ;;  %v1805_v31 = vpop.f32.mrf.mxu1 }
 0x165   : > { %1087 = vpow2.f32 %v867_v28  ;;  %v866_v33 = vmul.f32 -1.442695, %v470_v29  ;;  %v485_v34 = vadd.f32 %v948_v30, %v164_v17  ;;  %v1817_v28 = vpop.permute.xlu0 %238 }
 0x166   : > { %v479_v35 = vpop.f32.mrf.mxu0  ;;  %v1809_v36 = vpop.f32.mrf.mxu1 }
 0x167   : > { %1089 = vpow2.f32 %v866_v33  ;;  %v869_v22 = vmul.f32 -1.442695, %v485_v34  ;;  %v480_v9 = vadd.f32 %v479_v35, %v159_v7 }
 0x168   : > { %v951_v37 = vpop.f32.mrf.mxu0  ;;  %v1811_v38 = vpop.f32.mrf.mxu1 }
 0x169   : > { %1091 = vpow2.f32 %v869_v22  ;;  %v868_v24 = vmul.f32 -1.442695, %v480_v9  ;;  %v495_v25 = vadd.f32 %v951_v37, %v174_v18  ;;  %v1823_v22 = vpop.permute.xlu1 %253  ;;  %v1825_v42 = vpop.permute.xlu0 %248 }
 0x16a   : > { %v489_v8 = vpop.f32.mrf.mxu0  ;;  %v1815_v40 = vpop.f32.mrf.mxu1 }
 0x16b   : > { %1093 = vpow2.f32 %v868_v24  ;;  %v871_v17 = vmul.f32 -1.442695, %v495_v25  ;;  %v490_v29 = vadd.f32 %v489_v8, %v169_v10 }
 0x16c   : > { %v954_v30 = vpop.f32.mrf.mxu0  ;;  %v1819_v33 = vpop.f32.mrf.mxu1 }
 0x16d   : > { %1095 = vpow2.f32 %v871_v17  ;;  %v870_v34 = vmul.f32 -1.442695, %v490_v29  ;;  %v505_v35 = vadd.f32 %v954_v30, %v184_v19  ;;  %v1829_v45 = vpop.permute.xlu1 %263 }
 0x16e   : > { %v499_v7 = vpop.f32.mrf.mxu0  ;;  %v1821_v41 = vpop.f32.mrf.mxu1 }
 0x16f   : > { %1097 = vpow2.f32 %v870_v34  ;;  %v873_v18 = vmul.f32 -1.442695, %v505_v35  ;;  %v500_v37 = vadd.f32 %v499_v7, %v179_v11 }
 0x170   : > { %v957_v9 = vpop.f32.mrf.mxu0  ;;  %v1827_v8 = vpop.f32.mrf.mxu1 }
 0x171   : > { %1099 = vpow2.f32 %v873_v18  ;;  %v872_v24 = vmul.f32 -1.442695, %v500_v37  ;;  %v515_v10 = vadd.f32 %v957_v9, %v194_v20  ;;  %v1832_v37 = vpop.permute.xlu0 %258 }
 0x172   : > { %v1088_v25 = vpop.eup %1087  ;;  %v509_v17 = vpop.f32.mrf.mxu0 }
 0x173   : > { %v677_v29 = vadd.f32 1.0, %v1088_v25  ;;  %1101 = vpow2.f32 %v872_v24  ;;  %v875_v19 = vmul.f32 -1.442695, %v515_v10  ;;  %v510_v30 = vadd.f32 %v509_v17, %v189_v12  ;;  %v589_v20 = vpop.f32.mrf.mxu1 }
 0x174   : > { %v1090_v43 = vpop.eup %1089  ;;  %v960_v44 = vpop.f32.mrf.mxu0 }
 0x175   : > { %1103 = vrcp.f32 %v677_v29  ;;  %v676_v11 = vadd.f32 1.0, %v1090_v43  ;;  %v874_v34 = vmul.f32 -1.442695, %v510_v30  ;;  %v525_v35 = vadd.f32 %v960_v44, %v1787_v21  ;;  %v984_v44 = vpop.f32.mrf.mxu1 }
 0x176   : > { %v1092_v7 = vpop.eup %1091  ;;  %1105 = vpow2.f32 %v875_v19  ;;  %v519_v18 = vpop.f32.mrf.mxu0 }
 0x177   : > { %1107 = vrcp.f32 %v676_v11  ;;  %v679_v9 = vadd.f32 1.0, %v1092_v7  ;;  %v877_v24 = vmul.f32 -1.442695, %v525_v35  ;;  %v520_v12 = vadd.f32 %v519_v18, %v1789_v13  ;;  %v274_v7 = vpop.permute.xlu1 %273 }
 0x178   : > { %v1094_v10 = vpop.eup %1093  ;;  %1109 = vpow2.f32 %v874_v34  ;;  %v963_v25 = vpop.f32.mrf.mxu0 }
 0x179   : > { %1111 = vrcp.f32 %v679_v9  ;;  %v678_v17 = vadd.f32 1.0, %v1094_v10  ;;  %v876_v43 = vmul.f32 -1.442695, %v520_v12  ;;  %v535_v29 = vadd.f32 %v963_v25, %v1791_v6  ;;  %v269_v34 = vpop.permute.xlu0 %268  ;;  %v599_v10 = vpop.f32.mrf.mxu1 }
 0x17a   : > { %v1096_v21 = vpop.eup %1095  ;;  %1113 = vpow2.f32 %v877_v24  ;;  %v529_v19 = vpop.f32.mrf.mxu0 }
 0x17b   : > { %1115 = vrcp.f32 %v678_v17  ;;  %v681_v30 = vadd.f32 1.0, %v1096_v21  ;;  %v879_v46 = vmul.f32 -1.442695, %v535_v29  ;;  %v530_v11 = vadd.f32 %v529_v19, %v1793_v14 }
 0x17c   : > { %v1098_v35 = vpop.eup %1097  ;;  %1117 = vpow2.f32 %v876_v43  ;;  %v966_v13 = vpop.f32.mrf.mxu0  ;;  %v555_v43 = vadd.f32 %v1799_v23, %v1803_v27 }
 0x17d   : > { %1119 = vrcp.f32 %v681_v30  ;;  %v680_v18 = vadd.f32 1.0, %v1098_v35  ;;  %v878_v9 = vmul.f32 -1.442695, %v530_v11  ;;  %v545_v12 = vadd.f32 %v966_v13, %v1795_v15  ;;  %v284_v11 = vpop.permute.xlu1 %283  ;;  %v987_v15 = vpop.f32.mrf.mxu1 }
 0x17e   : > { %v1100_v6 = vpop.eup %1099  ;;  %1121 = vpow2.f32 %v879_v46  ;;  %v539_v24 = vpop.f32.mrf.mxu0  ;;  %v550_v13 = vadd.f32 %v1801_v26, %v1807_v32 }
 0x17f   : > { %1123 = vrcp.f32 %v680_v18  ;;  %v683_v25 = vadd.f32 1.0, %v1100_v6  ;;  %v881_v17 = vmul.f32 -1.442695, %v545_v12  ;;  %v540_v29 = vadd.f32 %v539_v24, %v1797_v16  ;;  %v609_v32 = vpop.f32.mrf.mxu1 }
 0x180   : > { %v1102_v14 = vpop.eup %1101  ;;  %1125 = vpow2.f32 %v878_v9  ;;  %v595_v16 = vadd.f32 %v1827_v8, %v274_v7  ;;  %v279_v9 = vpop.permute.xlu0 %278  ;;  %v565_v6 = vadd.f32 %v1805_v31, %v1813_v39 }
 0x181   : > { %1127 = vrcp.f32 %v683_v25  ;;  %v682_v21 = vadd.f32 1.0, %v1102_v14  ;;  %v880_v19 = vmul.f32 -1.442695, %v540_v29  ;;  %v590_v25 = vadd.f32 %v589_v20, %v269_v34 }
 0x182   : > { %v1104_v30 = vpop.eup %1103  ;;  %1129 = vpow2.f32 %v881_v17  ;;  %v560_v29 = vadd.f32 %v1809_v36, %v1817_v28  ;;  %v600_v36 = vadd.f32 %v599_v10, %v279_v9 }
 0x183   : > { %v1106_v35 = vpop.eup %1105  ;;  %v725_v46 = vmul.f32 %v1104_v30, %v555_v43  ;;  %1131 = vrcp.f32 %v682_v21  ;;  %v605_v43 = vadd.f32 %v984_v44, %v284_v11  ;;  %v575_v30 = vadd.f32 %v1811_v38, %v1823_v22  ;;  %v990_v44 = vpop.f32.mrf.mxu1 }
 0x184   : > { %v1108_v18 = vpop.eup %1107  ;;  %v685_v12 = vadd.f32 1.0, %v1106_v35  ;;  %1133 = vpow2.f32 %v880_v19  ;;  %v294_v19 = vpop.permute.xlu1 %293 }
 0x185   : > { %v1110_v23 = vpop.eup %1109  ;;  %v724_v27 = vmul.f32 %v1108_v18, %v550_v13  ;;  %v733_v24 = vadd.f32 %v725_v46, %v595_v16  ;;  %v289_v35 = vpop.permute.xlu0 %288  ;;  %v570_v46 = vadd.f32 %v1815_v40, %v1825_v42  ;;  %v615_v38 = vadd.f32 %v987_v15, %v294_v19 }
 0x186   : > { %v1112_v17 = vpop.eup %1111  ;;  %1135 = vrcp.f32 %v685_v12  ;;  %v684_v26 = vadd.f32 1.0, %v1110_v23  ;;  %v585_v12 = vadd.f32 %v1819_v33, %v1829_v45 }
 0x187   : > { %v1114_v14 = vpop.eup %1113  ;;  %v727_v8 = vmul.f32 %v1112_v17, %v565_v6  ;;  %1137 = vtanh.f32 %v733_v24  ;;  %v732_v7 = vadd.f32 %v724_v27, %v590_v25  ;;  %v610_v6 = vadd.f32 %v609_v32, %v289_v35  ;;  %v619_v17 = vpop.f32.mrf.mxu1 }
 0x188   : > { %v1116_v21 = vpop.eup %1115  ;;  %1139 = vrcp.f32 %v684_v26  ;;  %v687_v31 = vadd.f32 1.0, %v1114_v14  ;;  %v304_v42 = vpop.permute.xlu1 %303  ;;  %v580_v24 = vadd.f32 %v1821_v41, %v1832_v37 }
 0x189   : > { %v1118_v39 = vpop.eup %1117  ;;  %v726_v20 = vmul.f32 %v1116_v21, %v560_v29  ;;  %1141 = vtanh.f32 %v732_v7  ;;  %v735_v34 = vadd.f32 %v727_v8, %v605_v43  ;;  %v625_v45 = vadd.f32 %v990_v44, %v304_v42  ;;  %v299_v14 = vpop.permute.xlu0 %298 }
 0x18a   : > { %v1120_v28 = vpop.eup %1119  ;;  %1143 = vrcp.f32 %v687_v31  ;;  %v686_v13 = vadd.f32 1.0, %v1118_v39  ;;  %v620_v21 = vadd.f32 %v619_v17, %v299_v14 }
 0x18b   : > { %v1122_v11 = vpop.eup %1121  ;;  %v729_v16 = vmul.f32 %v1120_v28, %v575_v30  ;;  %1145 = vtanh.f32 %v735_v34  ;;  %v734_v18 = vadd.f32 %v726_v20, %v600_v36 }
 0x18c   : > { %v1124_v22 = vpop.eup %1123  ;;  %1147 = vrcp.f32 %v686_v13  ;;  %v689_v23 = vadd.f32 1.0, %v1122_v11 }
 0x18d   : > { %v1126_v10 = vpop.eup %1125  ;;  %v728_v9 = vmul.f32 %v1124_v22, %v570_v46  ;;  %1149 = vtanh.f32 %v734_v18  ;;  %v737_v27 = vadd.f32 %v729_v16, %v615_v38 }
 0x18e   : > { %v1128_v40 = vpop.eup %1127  ;;  %1151 = vrcp.f32 %v689_v23  ;;  %v688_v25 = vadd.f32 1.0, %v1126_v10 }
 0x18f   : > { %v1130_v15 = vpop.eup %1129  ;;  %v731_v29 = vmul.f32 %v1128_v40, %v585_v12  ;;  %1153 = vtanh.f32 %v737_v27  ;;  %v736_v26 = vadd.f32 %v728_v9, %v610_v6 }
 0x190   : > { %v1132_v33 = vpop.eup %1131  ;;  %1155 = vrcp.f32 %v688_v25  ;;  %v691_v8 = vadd.f32 1.0, %v1130_v15 }
 0x191   : > { %v1134_v7 = vpop.eup %1133  ;;  %v730_v32 = vmul.f32 %v1132_v33, %v580_v24  ;;  %1157 = vtanh.f32 %v736_v26  ;;  %v739_v43 = vadd.f32 %v731_v29, %v625_v45 }
 0x192   : > { %1159 = vrcp.f32 %v691_v8  ;;  %v690_v41 = vadd.f32 1.0, %v1134_v7 }
 0x193   : > { %v1136_v37 = vpop.eup %1135  ;;  %1161 = vtanh.f32 %v739_v43  ;;  %v738_v19 = vadd.f32 %v730_v32, %v620_v21 }
 0x194   : > { %v1138_v30 = vpop.eup %1137  ;;  %v749_v31 = vsub.f32 1.0, %v1136_v37  ;;  %1163 = vrcp.f32 %v690_v41  ;;  %v765_v34 = vmul.f32 %v1229_v2, %v1136_v37 }
 0x195   : > { %v1140_v39 = vpop.eup %1139  ;;  %1165 = vtanh.f32 %v738_v19 }
 0x196   : > { %v1142_v20 = vpop.eup %1141  ;;  %v757_v36 = vmul.f32 %v1138_v30, %v749_v31  ;;  %v748_v28 = vsub.f32 1.0, %v1140_v39  ;;  %v764_v13 = vmul.f32 %v1233_v4, %v1140_v39 }
 0x197   : > { %v1144_v35 = vpop.eup %1143 }
 0x198   : > { %v1146_v46 = vpop.eup %1145  ;;  %v773_v2 = vadd.f32 %v765_v34, %v757_v36   ;;  %v756_v44 = vmul.f32 %v1142_v20, %v748_v28  ;;  %v751_v11 = vsub.f32 1.0, %v1144_v35  ;;  %v767_v38 = vmul.f32 %v1221_v1, %v1144_v35 }
 0x199   : > { %v1148_v16 = vpop.eup %1147 }
 0x19a   : > { %v1150_v18 = vpop.eup %1149  ;;  %784 = vst.msk [vmem:[%s1861_s28 + $0x8] sm:$0xff] %vm782_vm1, %v773_v2  ;;  %v772_v4 = vadd.f32 %v764_v13, %v756_v44   ;;  %v759_v22 = vmul.f32 %v1146_v46, %v751_v11  ;;  %v750_v12 = vsub.f32 1.0, %v1148_v16  ;;  %v766_v9 = vmul.f32 %v1225_v3, %v1148_v16 }
 0x19b   : > { %v1152_v23 = vpop.eup %1151 }
 0x19c   : > { %v1154_v10 = vpop.eup %1153  ;;  %783 = vst.msk [vmem:[%s1861_s28] sm:$0xff] %vm782_vm1, %v772_v4  ;;  %v775_v1 = vadd.f32 %v767_v38, %v759_v22   ;;  %v758_v27 = vmul.f32 %v1150_v18, %v750_v12  ;;  %v753_v6 = vsub.f32 1.0, %v1152_v23  ;;  %v769_v24 = vmul.f32 %v1213_v5, %v1152_v23 }
 0x19d   : > { %v1156_v40 = vpop.eup %1155 }
 0x19e   : > { %v1158_v42 = vpop.eup %1157  ;;  %786 = vst.msk [vmem:[%s1861_s28 + $0x18] sm:$0xff] %vm782_vm1, %v775_v1  ;;  %v774_v3 = vadd.f32 %v766_v9, %v758_v27   ;;  %v761_v25 = vmul.f32 %v1154_v10, %v753_v6  ;;  %v752_v17 = vsub.f32 1.0, %v1156_v40  ;;  %v768_v26 = vmul.f32 %v1217_v63, %v1156_v40 }
 0x19f   : > { %v1160_v15 = vpop.eup %1159 }
 0x1a0   : > { %v1162_v29 = vpop.eup %1161  ;;  %785 = vst.msk [vmem:[%s1861_s28 + $0x10] sm:$0xff] %vm782_vm1, %v774_v3  ;;  %v777_v5 = vadd.f32 %v769_v24, %v761_v25   ;;  %v760_v45 = vmul.f32 %v1158_v42, %v752_v17  ;;  %v755_v33 = vsub.f32 1.0, %v1160_v15  ;;  %v771_v7 = vmul.f32 %v1205_v0, %v1160_v15 }
 0x1a1   : > { %v1164_v14 = vpop.eup %1163 }
 0x1a2   : > { %v1166_v8 = vpop.eup %1165  ;;  %791 = vst.msk [vmem:[%s789_s7 + $0x28] sm:$0xff] %vm782_vm1, %v777_v5  ;;  %v776_v63 = vadd.f32 %v768_v26, %v760_v45   ;;  %v763_v32 = vmul.f32 %v1162_v29, %v755_v33  ;;  %v754_v43 = vsub.f32 1.0, %v1164_v14  ;;  %v770_v21 = vmul.f32 %v1209_v61, %v1164_v14 }
 0x1a4   : > { %790 = vst.msk [vmem:[%s789_s7 + $0x20] sm:$0xff] %vm782_vm1, %v776_v63  ;;  %v779_v0 = vadd.f32 %v771_v7, %v763_v32   ;;  %v762_v41 = vmul.f32 %v1166_v8, %v754_v43  ;;  %133 = sbr.rel (!%p131_p0) target bundleno = 138 (0x8a), region = 46 }
 0x1a6   : > { %793 = vst.msk [vmem:[%s789_s7 + $0x38] sm:$0xff] %vm782_vm1, %v779_v0  ;;  %v778_v61 = vadd.f32 %v770_v21, %v762_v41  }
 0x1a8   : > { %792 = vst.msk [vmem:[%s789_s7 + $0x30] sm:$0xff] %vm782_vm1, %v778_v61 }

</bundles_post_ra>
